<compile_context>
chip_gen: v7x
topology: tpu7x:2x2x1
jax: 0.10.0
libtpu: 0.0.40
codegen_flags: <defaults>
</compile_context>

<pallas_src>
import functools
import math

import jax
import jax.numpy as jnp
from jax import lax
from jax.experimental import pallas as pl
from jax.experimental.pallas import tpu as pltpu


MM_DTYPE = jnp.bfloat16      # MXU matmul input dtype; accumulation is f32.
BF16_SUBLANE = 16            # bf16 sublane packing granularity
LANE = 128


def _sigmoid(x):
    # sigmoid(x) = 0.5 * (tanh(x/2) + 1): one EUP op + cheap VPU FMA.
    return 0.5 * (jnp.tanh(0.5 * x) + 1.0)


# ----------------------------- Pallas kernel ------------------------------ #

def _bilstm_cls_kernel(x_ref,                              # (S, BT, D)  bf16
                       wih_f_ref, whh_f_ref, b_f_ref,      # (D,4H) bf16, (H,4H) bf16, (1,4H) f32
                       wih_b_ref, whh_b_ref, b_b_ref,      # bwd-direction params
                       wcls_f_ref, wcls_b_ref, bcls_ref,   # (H,Lp) bf16 x2, (1,Lp) f32
                       out_ref,                            # (S, BT, Lp) f32
                       gin_f_ref, gin_b_ref,               # (S*BT, 4H) f32 scratch
                       hf_ref, hb_ref,                     # (S*BT, H)  bf16 scratch
                       *, unroll):
    S, BT, D = x_ref.shape
    H = whh_f_ref.shape[0]
    Lp = out_ref.shape[-1]

    # ---- (1) hoisted input projections: two big MXU matmuls, bias folded in.
    x2d = x_ref[...].reshape(S * BT, D)                    # already bf16
    gin_f_ref[...] = (jnp.dot(x2d, wih_f_ref[...],
                              preferred_element_type=jnp.float32)
                      + b_f_ref[...])
    gin_b_ref[...] = (jnp.dot(x2d, wih_b_ref[...],
                              preferred_element_type=jnp.float32)
                      + b_b_ref[...])

    whh_f = whh_f_ref[...]          # hoisted recurrent weight loads (bf16)
    whh_b = whh_b_ref[...]

    def gate_math(pre, c):
        # Gate columns were permuted in the wrapper to [i, f, o, g]:
        # one sigmoid over the contiguous (BT, 3H) slab + one tanh.
        sig = _sigmoid(pre[:, :3 * H])
        i_g = sig[:, 0 * H:1 * H]
        f_g = sig[:, 1 * H:2 * H]
        o_g = sig[:, 2 * H:3 * H]
        g_g = jnp.tanh(pre[:, 3 * H:4 * H])
        c_new = f_g * c + i_g * g_g
        h_new = o_g * jnp.tanh(c_new)
        return h_new, c_new

    zero = jnp.zeros((BT, H), jnp.float32)

    # ---- (2) fused fwd+bwd recurrence: only the unavoidable h @ W_hh matmul
    #          plus gate math remains inside the loop; moderate unroll keeps
    #          the two independent chains interleaved without vreg blowup.
    def body(t, carry):
        h_f, c_f, h_b, c_b = carry
        of = pl.multiple_of(t * BT, BT)
        ob = pl.multiple_of((S - 1 - t) * BT, BT)
        pre_f = (gin_f_ref[pl.ds(of, BT), :]
                 + jnp.dot(h_f.astype(MM_DTYPE), whh_f,
                           preferred_element_type=jnp.float32))
        pre_b = (gin_b_ref[pl.ds(ob, BT), :]
                 + jnp.dot(h_b.astype(MM_DTYPE), whh_b,
                           preferred_element_type=jnp.float32))
        h_f, c_f = gate_math(pre_f, c_f)
        h_b, c_b = gate_math(pre_b, c_b)
        hf_ref[pl.ds(of, BT), :] = h_f.astype(hf_ref.dtype)
        hb_ref[pl.ds(ob, BT), :] = h_b.astype(hb_ref.dtype)
        return h_f, c_f, h_b, c_b

    lax.fori_loop(0, S, body, (zero, zero, zero, zero), unroll=unroll)

    # ---- (3) dropout (eval) = identity; classifier with split weights
    #          (no concatenate, no XLU): logits = hf@Wf + hb@Wb + b.
    logits = (jnp.dot(hf_ref[...], wcls_f_ref[...],
                      preferred_element_type=jnp.float32)
              + jnp.dot(hb_ref[...], wcls_b_ref[...],
                        preferred_element_type=jnp.float32)
              + bcls_ref[...])                               # (S*BT, Lp)
    out_ref[...] = logits.reshape(S, BT, Lp)


# ------------------------------ wrapper ----------------------------------- #

def bilstm_token_classifier(sequence_output, params, *, max_bt=128):
    """sequence_output: (B, S, D) f32 -> logits (B, S, num_labels) f32."""
    B, S, D = sequence_output.shape
    H = params["whh_f"].shape[0]
    L = params["wcls"].shape[1]

    # Batch tile: as large as allowed (up to max_bt), 16-aligned so bf16
    # sublane packing / reshapes stay layout-clean.
    Bp0 = pl.cdiv(B, BF16_SUBLANE) * BF16_SUBLANE
    BT = min(max_bt, Bp0)
    Bp = pl.cdiv(Bp0, BT) * BT
    Lp = pl.cdiv(L, LANE) * LANE            # lane-dense output (unmasked vst)

    # time-major, batch-padded, bf16 (padded rows are discarded after call).
    x = jnp.transpose(sequence_output, (1, 0, 2)).astype(MM_DTYPE)
    if Bp != B:
        x = jnp.pad(x, ((0, 0), (0, Bp - B), (0, 0)))

    def permute_gates(w):
        # PyTorch gate column order [i, f, g, o] -> [i, f, o, g] so the kernel
        # can do one sigmoid over a contiguous 3H slab. Done once, cost-free.
        return jnp.concatenate(
            [w[..., :2 * H], w[..., 3 * H:4 * H], w[..., 2 * H:3 * H]], axis=-1)

    wih_f = permute_gates(params["wih_f"]).astype(MM_DTYPE)
    whh_f = permute_gates(params["whh_f"]).astype(MM_DTYPE)
    b_f = permute_gates(params["b_f"]).astype(jnp.float32)
    wih_b = permute_gates(params["wih_b"]).astype(MM_DTYPE)
    whh_b = permute_gates(params["whh_b"]).astype(MM_DTYPE)
    b_b = permute_gates(params["b_b"]).astype(jnp.float32)

    # classifier weights: pad label dim to 128 lanes, split fwd/bwd halves.
    wcls = jnp.pad(params["wcls"], ((0, 0), (0, Lp - L)))
    bcls = jnp.pad(params["bcls"], ((0, 0), (0, Lp - L))).astype(jnp.float32)
    wcls_f = wcls[:H].astype(MM_DTYPE)
    wcls_b = wcls[H:].astype(MM_DTYPE)

    args = (x, wih_f, whh_f, b_f, wih_b, whh_b, b_b, wcls_f, wcls_b, bcls)

    def _resident(a):   # whole array resident in VMEM (same block every step)
        return pl.BlockSpec(a.shape, lambda b, n=a.ndim: (0,) * n)

    # VMEM budget: double-buffered x/out blocks + resident params + scratch.
    bytes_in = 2 * S * BT * D * 2
    bytes_out = 2 * S * BT * Lp * 4
    bytes_par = 2 * sum(int(math.prod(a.shape)) * a.dtype.itemsize
                        for a in args[1:])
    bytes_scr = 2 * (S * BT * 4 * H) * 4 + 2 * (S * BT * H) * 2
    need = bytes_in + bytes_out + bytes_par + bytes_scr
    vmem_limit = int(min(max(need * 3 // 2 + (4 << 20), 32 << 20), 96 << 20))

    unroll = max(1, min(8, S))

    out = pl.pallas_call(
        functools.partial(_bilstm_cls_kernel, unroll=unroll),
        out_shape=jax.ShapeDtypeStruct((S, Bp, Lp), jnp.float32),
        grid_spec=pltpu.PrefetchScalarGridSpec(
            num_scalar_prefetch=0,
            grid=(Bp // BT,),               # batch-tile grid, fully parallel
            in_specs=[pl.BlockSpec((S, BT, D), lambda b: (0, b, 0))]
                     + [_resident(a) for a in args[1:]],
            out_specs=pl.BlockSpec((S, BT, Lp), lambda b: (0, b, 0)),
            scratch_shapes=[
                pltpu.VMEM((S * BT, 4 * H), jnp.float32),   # gates_in fwd
                pltpu.VMEM((S * BT, 4 * H), jnp.float32),   # gates_in bwd
                pltpu.VMEM((S * BT, H), MM_DTYPE),          # h fwd (bf16)
                pltpu.VMEM((S * BT, H), MM_DTYPE),          # h bwd (bf16)
            ],
        ),
        compiler_params=pltpu.CompilerParams(
            dimension_semantics=("parallel",),
            vmem_limit_bytes=vmem_limit,
        ),
    )(*args)

    # drop batch/label padding, back to batch_first
    return jnp.transpose(out[:, :B, :L], (1, 0, 2))


# --------------------- pure-JAX reference (for checking) ------------------ #

def _reference(sequence_output, params):
    B, S, D = sequence_output.shape
    H = params["whh_f"].shape[0]

    def make_step(wih, whh, b):
        wih = wih.astype(MM_DTYPE)
        whh = whh.astype(MM_DTYPE)

        def f(carry, x_t):
            h, c = carry
            gates = (jnp.dot(x_t.astype(MM_DTYPE), wih,
                             preferred_element_type=jnp.float32)
                     + jnp.dot(h.astype(MM_DTYPE), whh,
                               preferred_element_type=jnp.float32)
                     + b)
            i_g = jax.nn.sigmoid(gates[:, 0 * H:1 * H])
            f_g = jax.nn.sigmoid(gates[:, 1 * H:2 * H])
            g_g = jnp.tanh(gates[:, 2 * H:3 * H])
            o_g = jax.nn.sigmoid(gates[:, 3 * H:4 * H])
            c = f_g * c + i_g * g_g
            h = o_g * jnp.tanh(c)
            return (h, c), h
        return f

    x_sbd = jnp.transpose(sequence_output, (1, 0, 2)).astype(jnp.float32)
    h0 = jnp.zeros((B, H), jnp.float32)
    _, hf = lax.scan(make_step(params["wih_f"], params["whh_f"], params["b_f"]),
                     (h0, h0), x_sbd)
    _, hb = lax.scan(make_step(params["wih_b"], params["whh_b"], params["b_b"]),
                     (h0, h0), x_sbd[::-1])
    hb = hb[::-1]
    hcat = jnp.concatenate([hf, hb], axis=-1).astype(MM_DTYPE)   # (S, B, 2H)
    logits = (jnp.dot(hcat, params["wcls"].astype(MM_DTYPE),
                      preferred_element_type=jnp.float32)
              + params["bcls"])
    return jnp.transpose(logits, (1, 0, 2))


# --------------------------------- main ------------------------------------ #

if __name__ == "__main__":
    # Small shapes consistent with the module's forward:
    B, S = 2, 8            # batch, sequence length
    VOCAB = 100            # synthetic vocab
    D = 64                 # "BERT" hidden size (synthetic)
    H = 32                 # BiLSTM hidden size
    L = 8                  # num_labels

    key = jax.random.PRNGKey(0)
    keys = jax.random.split(key, 12)

    def init(k, shape, scale=0.1):
        return jax.random.normal(k, shape, jnp.float32) * scale

    # Synthetic stand-in for BERT output: embedding table lookup (glue).
    emb_table = init(keys[0], (VOCAB, D), scale=1.0)

    # LSTM params, stored pre-transposed: wih (D, 4H), whh (H, 4H), b (1, 4H)
    # b = b_ih + b_hh (PyTorch keeps two bias vectors that are summed).
    params = {
        "wih_f": init(keys[1], (D, 4 * H)),
        "whh_f": init(keys[2], (H, 4 * H)),
        "b_f":   init(keys[3], (1, 4 * H)) + init(keys[4], (1, 4 * H)),
        "wih_b": init(keys[5], (D, 4 * H)),
        "whh_b": init(keys[6], (H, 4 * H)),
        "b_b":   init(keys[7], (1, 4 * H)) + init(keys[8], (1, 4 * H)),
        "wcls":  init(keys[9], (2 * H, L)),
        "bcls":  init(keys[10], (1, L)),
    }

    input_ids = jax.random.randint(keys[11], (B, S), 0, VOCAB)
    # attention_mask defaults to all-ones in the module; no labels -> no loss.
    sequence_output = emb_table[input_ids]               # (B, S, D)

    logits = bilstm_token_classifier(sequence_output, params)
    logits = jax.block_until_ready(logits)

    ref = _reference(sequence_output, params)
    assert logits.shape == (B, S, L), logits.shape
    assert jnp.allclose(logits, ref, atol=3e-3, rtol=3e-3), (
        float(jnp.max(jnp.abs(logits - ref))))

    print("KERNEL_OK")
</pallas_src>

<mosaic_0001>
module attributes {stable_mosaic.version = 11 : i64} {
  func.func @_bilstm_cls_kernel(%arg0: i32, %arg1: memref<8x16x64xbf16, #tpu.memory_space<vmem>>, %arg2: memref<64x128xbf16, #tpu.memory_space<vmem>>, %arg3: memref<32x128xbf16, #tpu.memory_space<vmem>>, %arg4: memref<1x128xf32, #tpu.memory_space<vmem>>, %arg5: memref<64x128xbf16, #tpu.memory_space<vmem>>, %arg6: memref<32x128xbf16, #tpu.memory_space<vmem>>, %arg7: memref<1x128xf32, #tpu.memory_space<vmem>>, %arg8: memref<32x128xbf16, #tpu.memory_space<vmem>>, %arg9: memref<32x128xbf16, #tpu.memory_space<vmem>>, %arg10: memref<1x128xf32, #tpu.memory_space<vmem>>, %arg11: memref<8x16x128xf32, #tpu.memory_space<vmem>>, %arg12: memref<128x128xf32, #tpu.memory_space<vmem>>, %arg13: memref<128x128xf32, #tpu.memory_space<vmem>>, %arg14: memref<128x32xbf16, #tpu.memory_space<vmem>>, %arg15: memref<128x32xbf16, #tpu.memory_space<vmem>>) attributes {dimension_semantics = [#tpu.dimension_semantics<parallel>], iteration_bounds = array<i64: 1>, scalar_prefetch = 0 : i64, scratch_operands = 4 : i64, tpu.core_type = #tpu.core_type<tc>, window_params = [{transform_indices = @transform_0, window_bounds = array<i64: 8, 16, 64>}, {pipeline_mode = #tpu.pipeline_mode<synchronous>, transform_indices = @transform_1, window_bounds = array<i64: 64, 128>}, {pipeline_mode = #tpu.pipeline_mode<synchronous>, transform_indices = @transform_2, window_bounds = array<i64: 32, 128>}, {pipeline_mode = #tpu.pipeline_mode<synchronous>, transform_indices = @transform_3, window_bounds = array<i64: 1, 128>}, {pipeline_mode = #tpu.pipeline_mode<synchronous>, transform_indices = @transform_4, window_bounds = array<i64: 64, 128>}, {pipeline_mode = #tpu.pipeline_mode<synchronous>, transform_indices = @transform_5, window_bounds = array<i64: 32, 128>}, {pipeline_mode = #tpu.pipeline_mode<synchronous>, transform_indices = @transform_6, window_bounds = array<i64: 1, 128>}, {pipeline_mode = #tpu.pipeline_mode<synchronous>, transform_indices = @transform_7, window_bounds = array<i64: 32, 128>}, {pipeline_mode = #tpu.pipeline_mode<synchronous>, transform_indices = @transform_8, window_bounds = array<i64: 32, 128>}, {pipeline_mode = #tpu.pipeline_mode<synchronous>, transform_indices = @transform_9, window_bounds = array<i64: 1, 128>}, {transform_indices = @transform_10, window_bounds = array<i64: 8, 16, 128>}]} {
    %c0 = arith.constant 0 : index
    %c0_0 = arith.constant 0 : index
    %c0_1 = arith.constant 0 : index
    %0 = vector.load %arg1[%c0, %c0_0, %c0_1] : memref<8x16x64xbf16, #tpu.memory_space<vmem>>, vector<8x16x64xbf16>
    %1 = vector.shape_cast %0 : vector<8x16x64xbf16> to vector<128x64xbf16>
    %c0_2 = arith.constant 0 : index
    %c0_3 = arith.constant 0 : index
    %2 = vector.load %arg2[%c0_2, %c0_3] : memref<64x128xbf16, #tpu.memory_space<vmem>>, vector<64x128xbf16>
    %cst = arith.constant dense<0.000000e+00> : vector<128x128xf32>
    %3 = tpu.matmul %1, %2, %cst {dimension_numbers = #tpu.dot_dimension_numbers<[1], [0], [0], [1], [0, 0, 1, 1], [], []>} : vector<128x64xbf16>, vector<64x128xbf16>, vector<128x128xf32> -> vector<128x128xf32>
    %c0_4 = arith.constant 0 : index
    %c0_5 = arith.constant 0 : index
    %4 = vector.load %arg4[%c0_4, %c0_5] : memref<1x128xf32, #tpu.memory_space<vmem>>, vector<1x128xf32>
    %5 = vector.broadcast %4 : vector<1x128xf32> to vector<128x128xf32>
    %6 = arith.addf %3, %5 : vector<128x128xf32>
    %c0_6 = arith.constant 0 : index
    %c0_7 = arith.constant 0 : index
    %7 = vector.load %arg12[%c0_6, %c0_7] : memref<128x128xf32, #tpu.memory_space<vmem>>, vector<128x128xf32>
    tpu.vector_store %arg12[%c0_6, %c0_7], %6 {strides = array<i32>} : memref<128x128xf32, #tpu.memory_space<vmem>>, vector<128x128xf32>,
    %c0_8 = arith.constant 0 : index
    %c0_9 = arith.constant 0 : index
    %8 = vector.load %arg5[%c0_8, %c0_9] : memref<64x128xbf16, #tpu.memory_space<vmem>>, vector<64x128xbf16>
    %cst_10 = arith.constant dense<0.000000e+00> : vector<128x128xf32>
    %9 = tpu.matmul %1, %8, %cst_10 {dimension_numbers = #tpu.dot_dimension_numbers<[1], [0], [0], [1], [0, 0, 1, 1], [], []>} : vector<128x64xbf16>, vector<64x128xbf16>, vector<128x128xf32> -> vector<128x128xf32>
    %c0_11 = arith.constant 0 : index
    %c0_12 = arith.constant 0 : index
    %10 = vector.load %arg7[%c0_11, %c0_12] : memref<1x128xf32, #tpu.memory_space<vmem>>, vector<1x128xf32>
    %11 = vector.broadcast %10 : vector<1x128xf32> to vector<128x128xf32>
    %12 = arith.addf %9, %11 : vector<128x128xf32>
    %c0_13 = arith.constant 0 : index
    %c0_14 = arith.constant 0 : index
    %13 = vector.load %arg13[%c0_13, %c0_14] : memref<128x128xf32, #tpu.memory_space<vmem>>, vector<128x128xf32>
    tpu.vector_store %arg13[%c0_13, %c0_14], %12 {strides = array<i32>} : memref<128x128xf32, #tpu.memory_space<vmem>>, vector<128x128xf32>,
    %c0_15 = arith.constant 0 : index
    %c0_16 = arith.constant 0 : index
    %14 = vector.load %arg3[%c0_15, %c0_16] : memref<32x128xbf16, #tpu.memory_space<vmem>>, vector<32x128xbf16>
    %c0_17 = arith.constant 0 : index
    %c0_18 = arith.constant 0 : index
    %15 = vector.load %arg6[%c0_17, %c0_18] : memref<32x128xbf16, #tpu.memory_space<vmem>>, vector<32x128xbf16>
    %cst_19 = arith.constant 0.000000e+00 : f32
    %16 = vector.broadcast %cst_19 : f32 to vector<16x32xf32>
    %c0_i32 = arith.constant 0 : i32
    %c16_i32 = arith.constant 16 : i32
    %17 = arith.muli %c0_i32, %c16_i32 : i32
    %18 = tpu.assume_multiple %17, 16 : i32
    %c7_i32 = arith.constant 7 : i32
    %19 = arith.subi %c7_i32, %c0_i32 : i32
    %c16_i32_20 = arith.constant 16 : i32
    %20 = arith.muli %19, %c16_i32_20 : i32
    %21 = tpu.assume_multiple %20, 16 : i32
    %22 = arith.index_cast %18 : i32 to index
    %c0_21 = arith.constant 0 : index
    %23 = vector.load %arg12[%22, %c0_21] : memref<128x128xf32, #tpu.memory_space<vmem>>, vector<16x128xf32>
    %24 = arith.truncf %16 : vector<16x32xf32> to vector<16x32xbf16>
    %cst_22 = arith.constant dense<0.000000e+00> : vector<16x128xf32>
    %25 = tpu.matmul %24, %14, %cst_22 {dimension_numbers = #tpu.dot_dimension_numbers<[1], [0], [0], [1], [0, 0, 1, 1], [], []>} : vector<16x32xbf16>, vector<32x128xbf16>, vector<16x128xf32> -> vector<16x128xf32>
    %26 = arith.addf %23, %25 : vector<16x128xf32>
    %27 = arith.index_cast %21 : i32 to index
    %c0_23 = arith.constant 0 : index
    %28 = vector.load %arg13[%27, %c0_23] : memref<128x128xf32, #tpu.memory_space<vmem>>, vector<16x128xf32>
    %29 = arith.truncf %16 : vector<16x32xf32> to vector<16x32xbf16>
    %cst_24 = arith.constant dense<0.000000e+00> : vector<16x128xf32>
    %30 = tpu.matmul %29, %15, %cst_24 {dimension_numbers = #tpu.dot_dimension_numbers<[1], [0], [0], [1], [0, 0, 1, 1], [], []>} : vector<16x32xbf16>, vector<32x128xbf16>, vector<16x128xf32> -> vector<16x128xf32>
    %31 = arith.addf %28, %30 : vector<16x128xf32>
    %32 = vector.extract_strided_slice %26 {offsets = [0, 0], sizes = [16, 96], strides = [1, 1]} : vector<16x128xf32> to vector<16x96xf32>
    %cst_25 = arith.constant 5.000000e-01 : f32
    %33 = vector.broadcast %cst_25 : f32 to vector<16x96xf32>
    %34 = arith.mulf %33, %32 : vector<16x96xf32>
    %35 = math.tanh %34 : vector<16x96xf32>
    %cst_26 = arith.constant 1.000000e+00 : f32
    %36 = vector.broadcast %cst_26 : f32 to vector<16x96xf32>
    %37 = arith.addf %35, %36 : vector<16x96xf32>
    %cst_27 = arith.constant 5.000000e-01 : f32
    %38 = vector.broadcast %cst_27 : f32 to vector<16x96xf32>
    %39 = arith.mulf %38, %37 : vector<16x96xf32>
    %40 = vector.extract_strided_slice %39 {offsets = [0, 0], sizes = [16, 32], strides = [1, 1]} : vector<16x96xf32> to vector<16x32xf32>
    %41 = vector.extract_strided_slice %39 {offsets = [0, 32], sizes = [16, 32], strides = [1, 1]} : vector<16x96xf32> to vector<16x32xf32>
    %42 = vector.extract_strided_slice %39 {offsets = [0, 64], sizes = [16, 32], strides = [1, 1]} : vector<16x96xf32> to vector<16x32xf32>
    %43 = vector.extract_strided_slice %26 {offsets = [0, 96], sizes = [16, 32], strides = [1, 1]} : vector<16x128xf32> to vector<16x32xf32>
    %44 = math.tanh %43 : vector<16x32xf32>
    %45 = arith.mulf %41, %16 : vector<16x32xf32>
    %46 = arith.mulf %40, %44 : vector<16x32xf32>
    %47 = arith.addf %45, %46 : vector<16x32xf32>
    %48 = math.tanh %47 : vector<16x32xf32>
    %49 = arith.mulf %42, %48 : vector<16x32xf32>
    %50 = vector.extract_strided_slice %31 {offsets = [0, 0], sizes = [16, 96], strides = [1, 1]} : vector<16x128xf32> to vector<16x96xf32>
    %cst_28 = arith.constant 5.000000e-01 : f32
    %51 = vector.broadcast %cst_28 : f32 to vector<16x96xf32>
    %52 = arith.mulf %51, %50 : vector<16x96xf32>
    %53 = math.tanh %52 : vector<16x96xf32>
    %cst_29 = arith.constant 1.000000e+00 : f32
    %54 = vector.broadcast %cst_29 : f32 to vector<16x96xf32>
    %55 = arith.addf %53, %54 : vector<16x96xf32>
    %cst_30 = arith.constant 5.000000e-01 : f32
    %56 = vector.broadcast %cst_30 : f32 to vector<16x96xf32>
    %57 = arith.mulf %56, %55 : vector<16x96xf32>
    %58 = vector.extract_strided_slice %57 {offsets = [0, 0], sizes = [16, 32], strides = [1, 1]} : vector<16x96xf32> to vector<16x32xf32>
    %59 = vector.extract_strided_slice %57 {offsets = [0, 32], sizes = [16, 32], strides = [1, 1]} : vector<16x96xf32> to vector<16x32xf32>
    %60 = vector.extract_strided_slice %57 {offsets = [0, 64], sizes = [16, 32], strides = [1, 1]} : vector<16x96xf32> to vector<16x32xf32>
    %61 = vector.extract_strided_slice %31 {offsets = [0, 96], sizes = [16, 32], strides = [1, 1]} : vector<16x128xf32> to vector<16x32xf32>
    %62 = math.tanh %61 : vector<16x32xf32>
    %63 = arith.mulf %59, %16 : vector<16x32xf32>
    %64 = arith.mulf %58, %62 : vector<16x32xf32>
    %65 = arith.addf %63, %64 : vector<16x32xf32>
    %66 = math.tanh %65 : vector<16x32xf32>
    %67 = arith.mulf %60, %66 : vector<16x32xf32>
    %68 = arith.truncf %49 : vector<16x32xf32> to vector<16x32xbf16>
    %69 = arith.index_cast %18 : i32 to index
    %c0_31 = arith.constant 0 : index
    %70 = vector.load %arg14[%69, %c0_31] : memref<128x32xbf16, #tpu.memory_space<vmem>>, vector<16x32xbf16>
    tpu.vector_store %arg14[%69, %c0_31], %68 {strides = array<i32>} : memref<128x32xbf16, #tpu.memory_space<vmem>>, vector<16x32xbf16>,
    %71 = arith.truncf %67 : vector<16x32xf32> to vector<16x32xbf16>
    %72 = arith.index_cast %21 : i32 to index
    %c0_32 = arith.constant 0 : index
    %73 = vector.load %arg15[%72, %c0_32] : memref<128x32xbf16, #tpu.memory_space<vmem>>, vector<16x32xbf16>
    tpu.vector_store %arg15[%72, %c0_32], %71 {strides = array<i32>} : memref<128x32xbf16, #tpu.memory_space<vmem>>, vector<16x32xbf16>,
    %c1_i32 = arith.constant 1 : i32
    %c16_i32_33 = arith.constant 16 : i32
    %74 = arith.muli %c1_i32, %c16_i32_33 : i32
    %75 = tpu.assume_multiple %74, 16 : i32
    %c7_i32_34 = arith.constant 7 : i32
    %76 = arith.subi %c7_i32_34, %c1_i32 : i32
    %c16_i32_35 = arith.constant 16 : i32
    %77 = arith.muli %76, %c16_i32_35 : i32
    %78 = tpu.assume_multiple %77, 16 : i32
    %79 = arith.index_cast %75 : i32 to index
    %c0_36 = arith.constant 0 : index
    %80 = vector.load %arg12[%79, %c0_36] : memref<128x128xf32, #tpu.memory_space<vmem>>, vector<16x128xf32>
    %81 = arith.truncf %49 : vector<16x32xf32> to vector<16x32xbf16>
    %cst_37 = arith.constant dense<0.000000e+00> : vector<16x128xf32>
    %82 = tpu.matmul %81, %14, %cst_37 {dimension_numbers = #tpu.dot_dimension_numbers<[1], [0], [0], [1], [0, 0, 1, 1], [], []>} : vector<16x32xbf16>, vector<32x128xbf16>, vector<16x128xf32> -> vector<16x128xf32>
    %83 = arith.addf %80, %82 : vector<16x128xf32>
    %84 = arith.index_cast %78 : i32 to index
    %c0_38 = arith.constant 0 : index
    %85 = vector.load %arg13[%84, %c0_38] : memref<128x128xf32, #tpu.memory_space<vmem>>, vector<16x128xf32>
    %86 = arith.truncf %67 : vector<16x32xf32> to vector<16x32xbf16>
    %cst_39 = arith.constant dense<0.000000e+00> : vector<16x128xf32>
    %87 = tpu.matmul %86, %15, %cst_39 {dimension_numbers = #tpu.dot_dimension_numbers<[1], [0], [0], [1], [0, 0, 1, 1], [], []>} : vector<16x32xbf16>, vector<32x128xbf16>, vector<16x128xf32> -> vector<16x128xf32>
    %88 = arith.addf %85, %87 : vector<16x128xf32>
    %89 = vector.extract_strided_slice %83 {offsets = [0, 0], sizes = [16, 96], strides = [1, 1]} : vector<16x128xf32> to vector<16x96xf32>
    %cst_40 = arith.constant 5.000000e-01 : f32
    %90 = vector.broadcast %cst_40 : f32 to vector<16x96xf32>
    %91 = arith.mulf %90, %89 : vector<16x96xf32>
    %92 = math.tanh %91 : vector<16x96xf32>
    %cst_41 = arith.constant 1.000000e+00 : f32
    %93 = vector.broadcast %cst_41 : f32 to vector<16x96xf32>
    %94 = arith.addf %92, %93 : vector<16x96xf32>
    %cst_42 = arith.constant 5.000000e-01 : f32
    %95 = vector.broadcast %cst_42 : f32 to vector<16x96xf32>
    %96 = arith.mulf %95, %94 : vector<16x96xf32>
    %97 = vector.extract_strided_slice %96 {offsets = [0, 0], sizes = [16, 32], strides = [1, 1]} : vector<16x96xf32> to vector<16x32xf32>
    %98 = vector.extract_strided_slice %96 {offsets = [0, 32], sizes = [16, 32], strides = [1, 1]} : vector<16x96xf32> to vector<16x32xf32>
    %99 = vector.extract_strided_slice %96 {offsets = [0, 64], sizes = [16, 32], strides = [1, 1]} : vector<16x96xf32> to vector<16x32xf32>
    %100 = vector.extract_strided_slice %83 {offsets = [0, 96], sizes = [16, 32], strides = [1, 1]} : vector<16x128xf32> to vector<16x32xf32>
    %101 = math.tanh %100 : vector<16x32xf32>
    %102 = arith.mulf %98, %47 : vector<16x32xf32>
    %103 = arith.mulf %97, %101 : vector<16x32xf32>
    %104 = arith.addf %102, %103 : vector<16x32xf32>
    %105 = math.tanh %104 : vector<16x32xf32>
    %106 = arith.mulf %99, %105 : vector<16x32xf32>
    %107 = vector.extract_strided_slice %88 {offsets = [0, 0], sizes = [16, 96], strides = [1, 1]} : vector<16x128xf32> to vector<16x96xf32>
    %cst_43 = arith.constant 5.000000e-01 : f32
    %108 = vector.broadcast %cst_43 : f32 to vector<16x96xf32>
    %109 = arith.mulf %108, %107 : vector<16x96xf32>
    %110 = math.tanh %109 : vector<16x96xf32>
    %cst_44 = arith.constant 1.000000e+00 : f32
    %111 = vector.broadcast %cst_44 : f32 to vector<16x96xf32>
    %112 = arith.addf %110, %111 : vector<16x96xf32>
    %cst_45 = arith.constant 5.000000e-01 : f32
    %113 = vector.broadcast %cst_45 : f32 to vector<16x96xf32>
    %114 = arith.mulf %113, %112 : vector<16x96xf32>
    %115 = vector.extract_strided_slice %114 {offsets = [0, 0], sizes = [16, 32], strides = [1, 1]} : vector<16x96xf32> to vector<16x32xf32>
    %116 = vector.extract_strided_slice %114 {offsets = [0, 32], sizes = [16, 32], strides = [1, 1]} : vector<16x96xf32> to vector<16x32xf32>
    %117 = vector.extract_strided_slice %114 {offsets = [0, 64], sizes = [16, 32], strides = [1, 1]} : vector<16x96xf32> to vector<16x32xf32>
    %118 = vector.extract_strided_slice %88 {offsets = [0, 96], sizes = [16, 32], strides = [1, 1]} : vector<16x128xf32> to vector<16x32xf32>
    %119 = math.tanh %118 : vector<16x32xf32>
    %120 = arith.mulf %116, %65 : vector<16x32xf32>
    %121 = arith.mulf %115, %119 : vector<16x32xf32>
    %122 = arith.addf %120, %121 : vector<16x32xf32>
    %123 = math.tanh %122 : vector<16x32xf32>
    %124 = arith.mulf %117, %123 : vector<16x32xf32>
    %125 = arith.truncf %106 : vector<16x32xf32> to vector<16x32xbf16>
    %126 = arith.index_cast %75 : i32 to index
    %c0_46 = arith.constant 0 : index
    %127 = vector.load %arg14[%126, %c0_46] : memref<128x32xbf16, #tpu.memory_space<vmem>>, vector<16x32xbf16>
    tpu.vector_store %arg14[%126, %c0_46], %125 {strides = array<i32>} : memref<128x32xbf16, #tpu.memory_space<vmem>>, vector<16x32xbf16>,
    %128 = arith.truncf %124 : vector<16x32xf32> to vector<16x32xbf16>
    %129 = arith.index_cast %78 : i32 to index
    %c0_47 = arith.constant 0 : index
    %130 = vector.load %arg15[%129, %c0_47] : memref<128x32xbf16, #tpu.memory_space<vmem>>, vector<16x32xbf16>
    tpu.vector_store %arg15[%129, %c0_47], %128 {strides = array<i32>} : memref<128x32xbf16, #tpu.memory_space<vmem>>, vector<16x32xbf16>,
    %c2_i32 = arith.constant 2 : i32
    %c16_i32_48 = arith.constant 16 : i32
    %131 = arith.muli %c2_i32, %c16_i32_48 : i32
    %132 = tpu.assume_multiple %131, 16 : i32
    %c7_i32_49 = arith.constant 7 : i32
    %133 = arith.subi %c7_i32_49, %c2_i32 : i32
    %c16_i32_50 = arith.constant 16 : i32
    %134 = arith.muli %133, %c16_i32_50 : i32
    %135 = tpu.assume_multiple %134, 16 : i32
    %136 = arith.index_cast %132 : i32 to index
    %c0_51 = arith.constant 0 : index
    %137 = vector.load %arg12[%136, %c0_51] : memref<128x128xf32, #tpu.memory_space<vmem>>, vector<16x128xf32>
    %138 = arith.truncf %106 : vector<16x32xf32> to vector<16x32xbf16>
    %cst_52 = arith.constant dense<0.000000e+00> : vector<16x128xf32>
    %139 = tpu.matmul %138, %14, %cst_52 {dimension_numbers = #tpu.dot_dimension_numbers<[1], [0], [0], [1], [0, 0, 1, 1], [], []>} : vector<16x32xbf16>, vector<32x128xbf16>, vector<16x128xf32> -> vector<16x128xf32>
    %140 = arith.addf %137, %139 : vector<16x128xf32>
    %141 = arith.index_cast %135 : i32 to index
    %c0_53 = arith.constant 0 : index
    %142 = vector.load %arg13[%141, %c0_53] : memref<128x128xf32, #tpu.memory_space<vmem>>, vector<16x128xf32>
    %143 = arith.truncf %124 : vector<16x32xf32> to vector<16x32xbf16>
    %cst_54 = arith.constant dense<0.000000e+00> : vector<16x128xf32>
    %144 = tpu.matmul %143, %15, %cst_54 {dimension_numbers = #tpu.dot_dimension_numbers<[1], [0], [0], [1], [0, 0, 1, 1], [], []>} : vector<16x32xbf16>, vector<32x128xbf16>, vector<16x128xf32> -> vector<16x128xf32>
    %145 = arith.addf %142, %144 : vector<16x128xf32>
    %146 = vector.extract_strided_slice %140 {offsets = [0, 0], sizes = [16, 96], strides = [1, 1]} : vector<16x128xf32> to vector<16x96xf32>
    %cst_55 = arith.constant 5.000000e-01 : f32
    %147 = vector.broadcast %cst_55 : f32 to vector<16x96xf32>
    %148 = arith.mulf %147, %146 : vector<16x96xf32>
    %149 = math.tanh %148 : vector<16x96xf32>
    %cst_56 = arith.constant 1.000000e+00 : f32
    %150 = vector.broadcast %cst_56 : f32 to vector<16x96xf32>
    %151 = arith.addf %149, %150 : vector<16x96xf32>
    %cst_57 = arith.constant 5.000000e-01 : f32
    %152 = vector.broadcast %cst_57 : f32 to vector<16x96xf32>
    %153 = arith.mulf %152, %151 : vector<16x96xf32>
    %154 = vector.extract_strided_slice %153 {offsets = [0, 0], sizes = [16, 32], strides = [1, 1]} : vector<16x96xf32> to vector<16x32xf32>
    %155 = vector.extract_strided_slice %153 {offsets = [0, 32], sizes = [16, 32], strides = [1, 1]} : vector<16x96xf32> to vector<16x32xf32>
    %156 = vector.extract_strided_slice %153 {offsets = [0, 64], sizes = [16, 32], strides = [1, 1]} : vector<16x96xf32> to vector<16x32xf32>
    %157 = vector.extract_strided_slice %140 {offsets = [0, 96], sizes = [16, 32], strides = [1, 1]} : vector<16x128xf32> to vector<16x32xf32>
    %158 = math.tanh %157 : vector<16x32xf32>
    %159 = arith.mulf %155, %104 : vector<16x32xf32>
    %160 = arith.mulf %154, %158 : vector<16x32xf32>
    %161 = arith.addf %159, %160 : vector<16x32xf32>
    %162 = math.tanh %161 : vector<16x32xf32>
    %163 = arith.mulf %156, %162 : vector<16x32xf32>
    %164 = vector.extract_strided_slice %145 {offsets = [0, 0], sizes = [16, 96], strides = [1, 1]} : vector<16x128xf32> to vector<16x96xf32>
    %cst_58 = arith.constant 5.000000e-01 : f32
    %165 = vector.broadcast %cst_58 : f32 to vector<16x96xf32>
    %166 = arith.mulf %165, %164 : vector<16x96xf32>
    %167 = math.tanh %166 : vector<16x96xf32>
    %cst_59 = arith.constant 1.000000e+00 : f32
    %168 = vector.broadcast %cst_59 : f32 to vector<16x96xf32>
    %169 = arith.addf %167, %168 : vector<16x96xf32>
    %cst_60 = arith.constant 5.000000e-01 : f32
    %170 = vector.broadcast %cst_60 : f32 to vector<16x96xf32>
    %171 = arith.mulf %170, %169 : vector<16x96xf32>
    %172 = vector.extract_strided_slice %171 {offsets = [0, 0], sizes = [16, 32], strides = [1, 1]} : vector<16x96xf32> to vector<16x32xf32>
    %173 = vector.extract_strided_slice %171 {offsets = [0, 32], sizes = [16, 32], strides = [1, 1]} : vector<16x96xf32> to vector<16x32xf32>
    %174 = vector.extract_strided_slice %171 {offsets = [0, 64], sizes = [16, 32], strides = [1, 1]} : vector<16x96xf32> to vector<16x32xf32>
    %175 = vector.extract_strided_slice %145 {offsets = [0, 96], sizes = [16, 32], strides = [1, 1]} : vector<16x128xf32> to vector<16x32xf32>
    %176 = math.tanh %175 : vector<16x32xf32>
    %177 = arith.mulf %173, %122 : vector<16x32xf32>
    %178 = arith.mulf %172, %176 : vector<16x32xf32>
    %179 = arith.addf %177, %178 : vector<16x32xf32>
    %180 = math.tanh %179 : vector<16x32xf32>
    %181 = arith.mulf %174, %180 : vector<16x32xf32>
    %182 = arith.truncf %163 : vector<16x32xf32> to vector<16x32xbf16>
    %183 = arith.index_cast %132 : i32 to index
    %c0_61 = arith.constant 0 : index
    %184 = vector.load %arg14[%183, %c0_61] : memref<128x32xbf16, #tpu.memory_space<vmem>>, vector<16x32xbf16>
    tpu.vector_store %arg14[%183, %c0_61], %182 {strides = array<i32>} : memref<128x32xbf16, #tpu.memory_space<vmem>>, vector<16x32xbf16>,
    %185 = arith.truncf %181 : vector<16x32xf32> to vector<16x32xbf16>
    %186 = arith.index_cast %135 : i32 to index
    %c0_62 = arith.constant 0 : index
    %187 = vector.load %arg15[%186, %c0_62] : memref<128x32xbf16, #tpu.memory_space<vmem>>, vector<16x32xbf16>
    tpu.vector_store %arg15[%186, %c0_62], %185 {strides = array<i32>} : memref<128x32xbf16, #tpu.memory_space<vmem>>, vector<16x32xbf16>,
    %c3_i32 = arith.constant 3 : i32
    %c16_i32_63 = arith.constant 16 : i32
    %188 = arith.muli %c3_i32, %c16_i32_63 : i32
    %189 = tpu.assume_multiple %188, 16 : i32
    %c7_i32_64 = arith.constant 7 : i32
    %190 = arith.subi %c7_i32_64, %c3_i32 : i32
    %c16_i32_65 = arith.constant 16 : i32
    %191 = arith.muli %190, %c16_i32_65 : i32
    %192 = tpu.assume_multiple %191, 16 : i32
    %193 = arith.index_cast %189 : i32 to index
    %c0_66 = arith.constant 0 : index
    %194 = vector.load %arg12[%193, %c0_66] : memref<128x128xf32, #tpu.memory_space<vmem>>, vector<16x128xf32>
    %195 = arith.truncf %163 : vector<16x32xf32> to vector<16x32xbf16>
    %cst_67 = arith.constant dense<0.000000e+00> : vector<16x128xf32>
    %196 = tpu.matmul %195, %14, %cst_67 {dimension_numbers = #tpu.dot_dimension_numbers<[1], [0], [0], [1], [0, 0, 1, 1], [], []>} : vector<16x32xbf16>, vector<32x128xbf16>, vector<16x128xf32> -> vector<16x128xf32>
    %197 = arith.addf %194, %196 : vector<16x128xf32>
    %198 = arith.index_cast %192 : i32 to index
    %c0_68 = arith.constant 0 : index
    %199 = vector.load %arg13[%198, %c0_68] : memref<128x128xf32, #tpu.memory_space<vmem>>, vector<16x128xf32>
    %200 = arith.truncf %181 : vector<16x32xf32> to vector<16x32xbf16>
    %cst_69 = arith.constant dense<0.000000e+00> : vector<16x128xf32>
    %201 = tpu.matmul %200, %15, %cst_69 {dimension_numbers = #tpu.dot_dimension_numbers<[1], [0], [0], [1], [0, 0, 1, 1], [], []>} : vector<16x32xbf16>, vector<32x128xbf16>, vector<16x128xf32> -> vector<16x128xf32>
    %202 = arith.addf %199, %201 : vector<16x128xf32>
    %203 = vector.extract_strided_slice %197 {offsets = [0, 0], sizes = [16, 96], strides = [1, 1]} : vector<16x128xf32> to vector<16x96xf32>
    %cst_70 = arith.constant 5.000000e-01 : f32
    %204 = vector.broadcast %cst_70 : f32 to vector<16x96xf32>
    %205 = arith.mulf %204, %203 : vector<16x96xf32>
    %206 = math.tanh %205 : vector<16x96xf32>
    %cst_71 = arith.constant 1.000000e+00 : f32
    %207 = vector.broadcast %cst_71 : f32 to vector<16x96xf32>
    %208 = arith.addf %206, %207 : vector<16x96xf32>
    %cst_72 = arith.constant 5.000000e-01 : f32
    %209 = vector.broadcast %cst_72 : f32 to vector<16x96xf32>
    %210 = arith.mulf %209, %208 : vector<16x96xf32>
    %211 = vector.extract_strided_slice %210 {offsets = [0, 0], sizes = [16, 32], strides = [1, 1]} : vector<16x96xf32> to vector<16x32xf32>
    %212 = vector.extract_strided_slice %210 {offsets = [0, 32], sizes = [16, 32], strides = [1, 1]} : vector<16x96xf32> to vector<16x32xf32>
    %213 = vector.extract_strided_slice %210 {offsets = [0, 64], sizes = [16, 32], strides = [1, 1]} : vector<16x96xf32> to vector<16x32xf32>
    %214 = vector.extract_strided_slice %197 {offsets = [0, 96], sizes = [16, 32], strides = [1, 1]} : vector<16x128xf32> to vector<16x32xf32>
    %215 = math.tanh %214 : vector<16x32xf32>
    %216 = arith.mulf %212, %161 : vector<16x32xf32>
    %217 = arith.mulf %211, %215 : vector<16x32xf32>
    %218 = arith.addf %216, %217 : vector<16x32xf32>
    %219 = math.tanh %218 : vector<16x32xf32>
    %220 = arith.mulf %213, %219 : vector<16x32xf32>
    %221 = vector.extract_strided_slice %202 {offsets = [0, 0], sizes = [16, 96], strides = [1, 1]} : vector<16x128xf32> to vector<16x96xf32>
    %cst_73 = arith.constant 5.000000e-01 : f32
    %222 = vector.broadcast %cst_73 : f32 to vector<16x96xf32>
    %223 = arith.mulf %222, %221 : vector<16x96xf32>
    %224 = math.tanh %223 : vector<16x96xf32>
    %cst_74 = arith.constant 1.000000e+00 : f32
    %225 = vector.broadcast %cst_74 : f32 to vector<16x96xf32>
    %226 = arith.addf %224, %225 : vector<16x96xf32>
    %cst_75 = arith.constant 5.000000e-01 : f32
    %227 = vector.broadcast %cst_75 : f32 to vector<16x96xf32>
    %228 = arith.mulf %227, %226 : vector<16x96xf32>
    %229 = vector.extract_strided_slice %228 {offsets = [0, 0], sizes = [16, 32], strides = [1, 1]} : vector<16x96xf32> to vector<16x32xf32>
    %230 = vector.extract_strided_slice %228 {offsets = [0, 32], sizes = [16, 32], strides = [1, 1]} : vector<16x96xf32> to vector<16x32xf32>
    %231 = vector.extract_strided_slice %228 {offsets = [0, 64], sizes = [16, 32], strides = [1, 1]} : vector<16x96xf32> to vector<16x32xf32>
    %232 = vector.extract_strided_slice %202 {offsets = [0, 96], sizes = [16, 32], strides = [1, 1]} : vector<16x128xf32> to vector<16x32xf32>
    %233 = math.tanh %232 : vector<16x32xf32>
    %234 = arith.mulf %230, %179 : vector<16x32xf32>
    %235 = arith.mulf %229, %233 : vector<16x32xf32>
    %236 = arith.addf %234, %235 : vector<16x32xf32>
    %237 = math.tanh %236 : vector<16x32xf32>
    %238 = arith.mulf %231, %237 : vector<16x32xf32>
    %239 = arith.truncf %220 : vector<16x32xf32> to vector<16x32xbf16>
    %240 = arith.index_cast %189 : i32 to index
    %c0_76 = arith.constant 0 : index
    %241 = vector.load %arg14[%240, %c0_76] : memref<128x32xbf16, #tpu.memory_space<vmem>>, vector<16x32xbf16>
    tpu.vector_store %arg14[%240, %c0_76], %239 {strides = array<i32>} : memref<128x32xbf16, #tpu.memory_space<vmem>>, vector<16x32xbf16>,
    %242 = arith.truncf %238 : vector<16x32xf32> to vector<16x32xbf16>
    %243 = arith.index_cast %192 : i32 to index
    %c0_77 = arith.constant 0 : index
    %244 = vector.load %arg15[%243, %c0_77] : memref<128x32xbf16, #tpu.memory_space<vmem>>, vector<16x32xbf16>
    tpu.vector_store %arg15[%243, %c0_77], %242 {strides = array<i32>} : memref<128x32xbf16, #tpu.memory_space<vmem>>, vector<16x32xbf16>,
    %c4_i32 = arith.constant 4 : i32
    %c16_i32_78 = arith.constant 16 : i32
    %245 = arith.muli %c4_i32, %c16_i32_78 : i32
    %246 = tpu.assume_multiple %245, 16 : i32
    %c7_i32_79 = arith.constant 7 : i32
    %247 = arith.subi %c7_i32_79, %c4_i32 : i32
    %c16_i32_80 = arith.constant 16 : i32
    %248 = arith.muli %247, %c16_i32_80 : i32
    %249 = tpu.assume_multiple %248, 16 : i32
    %250 = arith.index_cast %246 : i32 to index
    %c0_81 = arith.constant 0 : index
    %251 = vector.load %arg12[%250, %c0_81] : memref<128x128xf32, #tpu.memory_space<vmem>>, vector<16x128xf32>
    %252 = arith.truncf %220 : vector<16x32xf32> to vector<16x32xbf16>
    %cst_82 = arith.constant dense<0.000000e+00> : vector<16x128xf32>
    %253 = tpu.matmul %252, %14, %cst_82 {dimension_numbers = #tpu.dot_dimension_numbers<[1], [0], [0], [1], [0, 0, 1, 1], [], []>} : vector<16x32xbf16>, vector<32x128xbf16>, vector<16x128xf32> -> vector<16x128xf32>
    %254 = arith.addf %251, %253 : vector<16x128xf32>
    %255 = arith.index_cast %249 : i32 to index
    %c0_83 = arith.constant 0 : index
    %256 = vector.load %arg13[%255, %c0_83] : memref<128x128xf32, #tpu.memory_space<vmem>>, vector<16x128xf32>
    %257 = arith.truncf %238 : vector<16x32xf32> to vector<16x32xbf16>
    %cst_84 = arith.constant dense<0.000000e+00> : vector<16x128xf32>
    %258 = tpu.matmul %257, %15, %cst_84 {dimension_numbers = #tpu.dot_dimension_numbers<[1], [0], [0], [1], [0, 0, 1, 1], [], []>} : vector<16x32xbf16>, vector<32x128xbf16>, vector<16x128xf32> -> vector<16x128xf32>
    %259 = arith.addf %256, %258 : vector<16x128xf32>
    %260 = vector.extract_strided_slice %254 {offsets = [0, 0], sizes = [16, 96], strides = [1, 1]} : vector<16x128xf32> to vector<16x96xf32>
    %cst_85 = arith.constant 5.000000e-01 : f32
    %261 = vector.broadcast %cst_85 : f32 to vector<16x96xf32>
    %262 = arith.mulf %261, %260 : vector<16x96xf32>
    %263 = math.tanh %262 : vector<16x96xf32>
    %cst_86 = arith.constant 1.000000e+00 : f32
    %264 = vector.broadcast %cst_86 : f32 to vector<16x96xf32>
    %265 = arith.addf %263, %264 : vector<16x96xf32>
    %cst_87 = arith.constant 5.000000e-01 : f32
    %266 = vector.broadcast %cst_87 : f32 to vector<16x96xf32>
    %267 = arith.mulf %266, %265 : vector<16x96xf32>
    %268 = vector.extract_strided_slice %267 {offsets = [0, 0], sizes = [16, 32], strides = [1, 1]} : vector<16x96xf32> to vector<16x32xf32>
    %269 = vector.extract_strided_slice %267 {offsets = [0, 32], sizes = [16, 32], strides = [1, 1]} : vector<16x96xf32> to vector<16x32xf32>
    %270 = vector.extract_strided_slice %267 {offsets = [0, 64], sizes = [16, 32], strides = [1, 1]} : vector<16x96xf32> to vector<16x32xf32>
    %271 = vector.extract_strided_slice %254 {offsets = [0, 96], sizes = [16, 32], strides = [1, 1]} : vector<16x128xf32> to vector<16x32xf32>
    %272 = math.tanh %271 : vector<16x32xf32>
    %273 = arith.mulf %269, %218 : vector<16x32xf32>
    %274 = arith.mulf %268, %272 : vector<16x32xf32>
    %275 = arith.addf %273, %274 : vector<16x32xf32>
    %276 = math.tanh %275 : vector<16x32xf32>
    %277 = arith.mulf %270, %276 : vector<16x32xf32>
    %278 = vector.extract_strided_slice %259 {offsets = [0, 0], sizes = [16, 96], strides = [1, 1]} : vector<16x128xf32> to vector<16x96xf32>
    %cst_88 = arith.constant 5.000000e-01 : f32
    %279 = vector.broadcast %cst_88 : f32 to vector<16x96xf32>
    %280 = arith.mulf %279, %278 : vector<16x96xf32>
    %281 = math.tanh %280 : vector<16x96xf32>
    %cst_89 = arith.constant 1.000000e+00 : f32
    %282 = vector.broadcast %cst_89 : f32 to vector<16x96xf32>
    %283 = arith.addf %281, %282 : vector<16x96xf32>
    %cst_90 = arith.constant 5.000000e-01 : f32
    %284 = vector.broadcast %cst_90 : f32 to vector<16x96xf32>
    %285 = arith.mulf %284, %283 : vector<16x96xf32>
    %286 = vector.extract_strided_slice %285 {offsets = [0, 0], sizes = [16, 32], strides = [1, 1]} : vector<16x96xf32> to vector<16x32xf32>
    %287 = vector.extract_strided_slice %285 {offsets = [0, 32], sizes = [16, 32], strides = [1, 1]} : vector<16x96xf32> to vector<16x32xf32>
    %288 = vector.extract_strided_slice %285 {offsets = [0, 64], sizes = [16, 32], strides = [1, 1]} : vector<16x96xf32> to vector<16x32xf32>
    %289 = vector.extract_strided_slice %259 {offsets = [0, 96], sizes = [16, 32], strides = [1, 1]} : vector<16x128xf32> to vector<16x32xf32>
    %290 = math.tanh %289 : vector<16x32xf32>
    %291 = arith.mulf %287, %236 : vector<16x32xf32>
    %292 = arith.mulf %286, %290 : vector<16x32xf32>
    %293 = arith.addf %291, %292 : vector<16x32xf32>
    %294 = math.tanh %293 : vector<16x32xf32>
    %295 = arith.mulf %288, %294 : vector<16x32xf32>
    %296 = arith.truncf %277 : vector<16x32xf32> to vector<16x32xbf16>
    %297 = arith.index_cast %246 : i32 to index
    %c0_91 = arith.constant 0 : index
    %298 = vector.load %arg14[%297, %c0_91] : memref<128x32xbf16, #tpu.memory_space<vmem>>, vector<16x32xbf16>
    tpu.vector_store %arg14[%297, %c0_91], %296 {strides = array<i32>} : memref<128x32xbf16, #tpu.memory_space<vmem>>, vector<16x32xbf16>,
    %299 = arith.truncf %295 : vector<16x32xf32> to vector<16x32xbf16>
    %300 = arith.index_cast %249 : i32 to index
    %c0_92 = arith.constant 0 : index
    %301 = vector.load %arg15[%300, %c0_92] : memref<128x32xbf16, #tpu.memory_space<vmem>>, vector<16x32xbf16>
    tpu.vector_store %arg15[%300, %c0_92], %299 {strides = array<i32>} : memref<128x32xbf16, #tpu.memory_space<vmem>>, vector<16x32xbf16>,
    %c5_i32 = arith.constant 5 : i32
    %c16_i32_93 = arith.constant 16 : i32
    %302 = arith.muli %c5_i32, %c16_i32_93 : i32
    %303 = tpu.assume_multiple %302, 16 : i32
    %c7_i32_94 = arith.constant 7 : i32
    %304 = arith.subi %c7_i32_94, %c5_i32 : i32
    %c16_i32_95 = arith.constant 16 : i32
    %305 = arith.muli %304, %c16_i32_95 : i32
    %306 = tpu.assume_multiple %305, 16 : i32
    %307 = arith.index_cast %303 : i32 to index
    %c0_96 = arith.constant 0 : index
    %308 = vector.load %arg12[%307, %c0_96] : memref<128x128xf32, #tpu.memory_space<vmem>>, vector<16x128xf32>
    %309 = arith.truncf %277 : vector<16x32xf32> to vector<16x32xbf16>
    %cst_97 = arith.constant dense<0.000000e+00> : vector<16x128xf32>
    %310 = tpu.matmul %309, %14, %cst_97 {dimension_numbers = #tpu.dot_dimension_numbers<[1], [0], [0], [1], [0, 0, 1, 1], [], []>} : vector<16x32xbf16>, vector<32x128xbf16>, vector<16x128xf32> -> vector<16x128xf32>
    %311 = arith.addf %308, %310 : vector<16x128xf32>
    %312 = arith.index_cast %306 : i32 to index
    %c0_98 = arith.constant 0 : index
    %313 = vector.load %arg13[%312, %c0_98] : memref<128x128xf32, #tpu.memory_space<vmem>>, vector<16x128xf32>
    %314 = arith.truncf %295 : vector<16x32xf32> to vector<16x32xbf16>
    %cst_99 = arith.constant dense<0.000000e+00> : vector<16x128xf32>
    %315 = tpu.matmul %314, %15, %cst_99 {dimension_numbers = #tpu.dot_dimension_numbers<[1], [0], [0], [1], [0, 0, 1, 1], [], []>} : vector<16x32xbf16>, vector<32x128xbf16>, vector<16x128xf32> -> vector<16x128xf32>
    %316 = arith.addf %313, %315 : vector<16x128xf32>
    %317 = vector.extract_strided_slice %311 {offsets = [0, 0], sizes = [16, 96], strides = [1, 1]} : vector<16x128xf32> to vector<16x96xf32>
    %cst_100 = arith.constant 5.000000e-01 : f32
    %318 = vector.broadcast %cst_100 : f32 to vector<16x96xf32>
    %319 = arith.mulf %318, %317 : vector<16x96xf32>
    %320 = math.tanh %319 : vector<16x96xf32>
    %cst_101 = arith.constant 1.000000e+00 : f32
    %321 = vector.broadcast %cst_101 : f32 to vector<16x96xf32>
    %322 = arith.addf %320, %321 : vector<16x96xf32>
    %cst_102 = arith.constant 5.000000e-01 : f32
    %323 = vector.broadcast %cst_102 : f32 to vector<16x96xf32>
    %324 = arith.mulf %323, %322 : vector<16x96xf32>
    %325 = vector.extract_strided_slice %324 {offsets = [0, 0], sizes = [16, 32], strides = [1, 1]} : vector<16x96xf32> to vector<16x32xf32>
    %326 = vector.extract_strided_slice %324 {offsets = [0, 32], sizes = [16, 32], strides = [1, 1]} : vector<16x96xf32> to vector<16x32xf32>
    %327 = vector.extract_strided_slice %324 {offsets = [0, 64], sizes = [16, 32], strides = [1, 1]} : vector<16x96xf32> to vector<16x32xf32>
    %328 = vector.extract_strided_slice %311 {offsets = [0, 96], sizes = [16, 32], strides = [1, 1]} : vector<16x128xf32> to vector<16x32xf32>
    %329 = math.tanh %328 : vector<16x32xf32>
    %330 = arith.mulf %326, %275 : vector<16x32xf32>
    %331 = arith.mulf %325, %329 : vector<16x32xf32>
    %332 = arith.addf %330, %331 : vector<16x32xf32>
    %333 = math.tanh %332 : vector<16x32xf32>
    %334 = arith.mulf %327, %333 : vector<16x32xf32>
    %335 = vector.extract_strided_slice %316 {offsets = [0, 0], sizes = [16, 96], strides = [1, 1]} : vector<16x128xf32> to vector<16x96xf32>
    %cst_103 = arith.constant 5.000000e-01 : f32
    %336 = vector.broadcast %cst_103 : f32 to vector<16x96xf32>
    %337 = arith.mulf %336, %335 : vector<16x96xf32>
    %338 = math.tanh %337 : vector<16x96xf32>
    %cst_104 = arith.constant 1.000000e+00 : f32
    %339 = vector.broadcast %cst_104 : f32 to vector<16x96xf32>
    %340 = arith.addf %338, %339 : vector<16x96xf32>
    %cst_105 = arith.constant 5.000000e-01 : f32
    %341 = vector.broadcast %cst_105 : f32 to vector<16x96xf32>
    %342 = arith.mulf %341, %340 : vector<16x96xf32>
    %343 = vector.extract_strided_slice %342 {offsets = [0, 0], sizes = [16, 32], strides = [1, 1]} : vector<16x96xf32> to vector<16x32xf32>
    %344 = vector.extract_strided_slice %342 {offsets = [0, 32], sizes = [16, 32], strides = [1, 1]} : vector<16x96xf32> to vector<16x32xf32>
    %345 = vector.extract_strided_slice %342 {offsets = [0, 64], sizes = [16, 32], strides = [1, 1]} : vector<16x96xf32> to vector<16x32xf32>
    %346 = vector.extract_strided_slice %316 {offsets = [0, 96], sizes = [16, 32], strides = [1, 1]} : vector<16x128xf32> to vector<16x32xf32>
    %347 = math.tanh %346 : vector<16x32xf32>
    %348 = arith.mulf %344, %293 : vector<16x32xf32>
    %349 = arith.mulf %343, %347 : vector<16x32xf32>
    %350 = arith.addf %348, %349 : vector<16x32xf32>
    %351 = math.tanh %350 : vector<16x32xf32>
    %352 = arith.mulf %345, %351 : vector<16x32xf32>
    %353 = arith.truncf %334 : vector<16x32xf32> to vector<16x32xbf16>
    %354 = arith.index_cast %303 : i32 to index
    %c0_106 = arith.constant 0 : index
    %355 = vector.load %arg14[%354, %c0_106] : memref<128x32xbf16, #tpu.memory_space<vmem>>, vector<16x32xbf16>
    tpu.vector_store %arg14[%354, %c0_106], %353 {strides = array<i32>} : memref<128x32xbf16, #tpu.memory_space<vmem>>, vector<16x32xbf16>,
    %356 = arith.truncf %352 : vector<16x32xf32> to vector<16x32xbf16>
    %357 = arith.index_cast %306 : i32 to index
    %c0_107 = arith.constant 0 : index
    %358 = vector.load %arg15[%357, %c0_107] : memref<128x32xbf16, #tpu.memory_space<vmem>>, vector<16x32xbf16>
    tpu.vector_store %arg15[%357, %c0_107], %356 {strides = array<i32>} : memref<128x32xbf16, #tpu.memory_space<vmem>>, vector<16x32xbf16>,
    %c6_i32 = arith.constant 6 : i32
    %c16_i32_108 = arith.constant 16 : i32
    %359 = arith.muli %c6_i32, %c16_i32_108 : i32
    %360 = tpu.assume_multiple %359, 16 : i32
    %c7_i32_109 = arith.constant 7 : i32
    %361 = arith.subi %c7_i32_109, %c6_i32 : i32
    %c16_i32_110 = arith.constant 16 : i32
    %362 = arith.muli %361, %c16_i32_110 : i32
    %363 = tpu.assume_multiple %362, 16 : i32
    %364 = arith.index_cast %360 : i32 to index
    %c0_111 = arith.constant 0 : index
    %365 = vector.load %arg12[%364, %c0_111] : memref<128x128xf32, #tpu.memory_space<vmem>>, vector<16x128xf32>
    %366 = arith.truncf %334 : vector<16x32xf32> to vector<16x32xbf16>
    %cst_112 = arith.constant dense<0.000000e+00> : vector<16x128xf32>
    %367 = tpu.matmul %366, %14, %cst_112 {dimension_numbers = #tpu.dot_dimension_numbers<[1], [0], [0], [1], [0, 0, 1, 1], [], []>} : vector<16x32xbf16>, vector<32x128xbf16>, vector<16x128xf32> -> vector<16x128xf32>
    %368 = arith.addf %365, %367 : vector<16x128xf32>
    %369 = arith.index_cast %363 : i32 to index
    %c0_113 = arith.constant 0 : index
    %370 = vector.load %arg13[%369, %c0_113] : memref<128x128xf32, #tpu.memory_space<vmem>>, vector<16x128xf32>
    %371 = arith.truncf %352 : vector<16x32xf32> to vector<16x32xbf16>
    %cst_114 = arith.constant dense<0.000000e+00> : vector<16x128xf32>
    %372 = tpu.matmul %371, %15, %cst_114 {dimension_numbers = #tpu.dot_dimension_numbers<[1], [0], [0], [1], [0, 0, 1, 1], [], []>} : vector<16x32xbf16>, vector<32x128xbf16>, vector<16x128xf32> -> vector<16x128xf32>
    %373 = arith.addf %370, %372 : vector<16x128xf32>
    %374 = vector.extract_strided_slice %368 {offsets = [0, 0], sizes = [16, 96], strides = [1, 1]} : vector<16x128xf32> to vector<16x96xf32>
    %cst_115 = arith.constant 5.000000e-01 : f32
    %375 = vector.broadcast %cst_115 : f32 to vector<16x96xf32>
    %376 = arith.mulf %375, %374 : vector<16x96xf32>
    %377 = math.tanh %376 : vector<16x96xf32>
    %cst_116 = arith.constant 1.000000e+00 : f32
    %378 = vector.broadcast %cst_116 : f32 to vector<16x96xf32>
    %379 = arith.addf %377, %378 : vector<16x96xf32>
    %cst_117 = arith.constant 5.000000e-01 : f32
    %380 = vector.broadcast %cst_117 : f32 to vector<16x96xf32>
    %381 = arith.mulf %380, %379 : vector<16x96xf32>
    %382 = vector.extract_strided_slice %381 {offsets = [0, 0], sizes = [16, 32], strides = [1, 1]} : vector<16x96xf32> to vector<16x32xf32>
    %383 = vector.extract_strided_slice %381 {offsets = [0, 32], sizes = [16, 32], strides = [1, 1]} : vector<16x96xf32> to vector<16x32xf32>
    %384 = vector.extract_strided_slice %381 {offsets = [0, 64], sizes = [16, 32], strides = [1, 1]} : vector<16x96xf32> to vector<16x32xf32>
    %385 = vector.extract_strided_slice %368 {offsets = [0, 96], sizes = [16, 32], strides = [1, 1]} : vector<16x128xf32> to vector<16x32xf32>
    %386 = math.tanh %385 : vector<16x32xf32>
    %387 = arith.mulf %383, %332 : vector<16x32xf32>
    %388 = arith.mulf %382, %386 : vector<16x32xf32>
    %389 = arith.addf %387, %388 : vector<16x32xf32>
    %390 = math.tanh %389 : vector<16x32xf32>
    %391 = arith.mulf %384, %390 : vector<16x32xf32>
    %392 = vector.extract_strided_slice %373 {offsets = [0, 0], sizes = [16, 96], strides = [1, 1]} : vector<16x128xf32> to vector<16x96xf32>
    %cst_118 = arith.constant 5.000000e-01 : f32
    %393 = vector.broadcast %cst_118 : f32 to vector<16x96xf32>
    %394 = arith.mulf %393, %392 : vector<16x96xf32>
    %395 = math.tanh %394 : vector<16x96xf32>
    %cst_119 = arith.constant 1.000000e+00 : f32
    %396 = vector.broadcast %cst_119 : f32 to vector<16x96xf32>
    %397 = arith.addf %395, %396 : vector<16x96xf32>
    %cst_120 = arith.constant 5.000000e-01 : f32
    %398 = vector.broadcast %cst_120 : f32 to vector<16x96xf32>
    %399 = arith.mulf %398, %397 : vector<16x96xf32>
    %400 = vector.extract_strided_slice %399 {offsets = [0, 0], sizes = [16, 32], strides = [1, 1]} : vector<16x96xf32> to vector<16x32xf32>
    %401 = vector.extract_strided_slice %399 {offsets = [0, 32], sizes = [16, 32], strides = [1, 1]} : vector<16x96xf32> to vector<16x32xf32>
    %402 = vector.extract_strided_slice %399 {offsets = [0, 64], sizes = [16, 32], strides = [1, 1]} : vector<16x96xf32> to vector<16x32xf32>
    %403 = vector.extract_strided_slice %373 {offsets = [0, 96], sizes = [16, 32], strides = [1, 1]} : vector<16x128xf32> to vector<16x32xf32>
    %404 = math.tanh %403 : vector<16x32xf32>
    %405 = arith.mulf %401, %350 : vector<16x32xf32>
    %406 = arith.mulf %400, %404 : vector<16x32xf32>
    %407 = arith.addf %405, %406 : vector<16x32xf32>
    %408 = math.tanh %407 : vector<16x32xf32>
    %409 = arith.mulf %402, %408 : vector<16x32xf32>
    %410 = arith.truncf %391 : vector<16x32xf32> to vector<16x32xbf16>
    %411 = arith.index_cast %360 : i32 to index
    %c0_121 = arith.constant 0 : index
    %412 = vector.load %arg14[%411, %c0_121] : memref<128x32xbf16, #tpu.memory_space<vmem>>, vector<16x32xbf16>
    tpu.vector_store %arg14[%411, %c0_121], %410 {strides = array<i32>} : memref<128x32xbf16, #tpu.memory_space<vmem>>, vector<16x32xbf16>,
    %413 = arith.truncf %409 : vector<16x32xf32> to vector<16x32xbf16>
    %414 = arith.index_cast %363 : i32 to index
    %c0_122 = arith.constant 0 : index
    %415 = vector.load %arg15[%414, %c0_122] : memref<128x32xbf16, #tpu.memory_space<vmem>>, vector<16x32xbf16>
    tpu.vector_store %arg15[%414, %c0_122], %413 {strides = array<i32>} : memref<128x32xbf16, #tpu.memory_space<vmem>>, vector<16x32xbf16>,
    %c7_i32_123 = arith.constant 7 : i32
    %c16_i32_124 = arith.constant 16 : i32
    %416 = arith.muli %c7_i32_123, %c16_i32_124 : i32
    %417 = tpu.assume_multiple %416, 16 : i32
    %c7_i32_125 = arith.constant 7 : i32
    %418 = arith.subi %c7_i32_125, %c7_i32_123 : i32
    %c16_i32_126 = arith.constant 16 : i32
    %419 = arith.muli %418, %c16_i32_126 : i32
    %420 = tpu.assume_multiple %419, 16 : i32
    %421 = arith.index_cast %417 : i32 to index
    %c0_127 = arith.constant 0 : index
    %422 = vector.load %arg12[%421, %c0_127] : memref<128x128xf32, #tpu.memory_space<vmem>>, vector<16x128xf32>
    %423 = arith.truncf %391 : vector<16x32xf32> to vector<16x32xbf16>
    %cst_128 = arith.constant dense<0.000000e+00> : vector<16x128xf32>
    %424 = tpu.matmul %423, %14, %cst_128 {dimension_numbers = #tpu.dot_dimension_numbers<[1], [0], [0], [1], [0, 0, 1, 1], [], []>} : vector<16x32xbf16>, vector<32x128xbf16>, vector<16x128xf32> -> vector<16x128xf32>
    %425 = arith.addf %422, %424 : vector<16x128xf32>
    %426 = arith.index_cast %420 : i32 to index
    %c0_129 = arith.constant 0 : index
    %427 = vector.load %arg13[%426, %c0_129] : memref<128x128xf32, #tpu.memory_space<vmem>>, vector<16x128xf32>
    %428 = arith.truncf %409 : vector<16x32xf32> to vector<16x32xbf16>
    %cst_130 = arith.constant dense<0.000000e+00> : vector<16x128xf32>
    %429 = tpu.matmul %428, %15, %cst_130 {dimension_numbers = #tpu.dot_dimension_numbers<[1], [0], [0], [1], [0, 0, 1, 1], [], []>} : vector<16x32xbf16>, vector<32x128xbf16>, vector<16x128xf32> -> vector<16x128xf32>
    %430 = arith.addf %427, %429 : vector<16x128xf32>
    %431 = vector.extract_strided_slice %425 {offsets = [0, 0], sizes = [16, 96], strides = [1, 1]} : vector<16x128xf32> to vector<16x96xf32>
    %cst_131 = arith.constant 5.000000e-01 : f32
    %432 = vector.broadcast %cst_131 : f32 to vector<16x96xf32>
    %433 = arith.mulf %432, %431 : vector<16x96xf32>
    %434 = math.tanh %433 : vector<16x96xf32>
    %cst_132 = arith.constant 1.000000e+00 : f32
    %435 = vector.broadcast %cst_132 : f32 to vector<16x96xf32>
    %436 = arith.addf %434, %435 : vector<16x96xf32>
    %cst_133 = arith.constant 5.000000e-01 : f32
    %437 = vector.broadcast %cst_133 : f32 to vector<16x96xf32>
    %438 = arith.mulf %437, %436 : vector<16x96xf32>
    %439 = vector.extract_strided_slice %438 {offsets = [0, 0], sizes = [16, 32], strides = [1, 1]} : vector<16x96xf32> to vector<16x32xf32>
    %440 = vector.extract_strided_slice %438 {offsets = [0, 32], sizes = [16, 32], strides = [1, 1]} : vector<16x96xf32> to vector<16x32xf32>
    %441 = vector.extract_strided_slice %438 {offsets = [0, 64], sizes = [16, 32], strides = [1, 1]} : vector<16x96xf32> to vector<16x32xf32>
    %442 = vector.extract_strided_slice %425 {offsets = [0, 96], sizes = [16, 32], strides = [1, 1]} : vector<16x128xf32> to vector<16x32xf32>
    %443 = math.tanh %442 : vector<16x32xf32>
    %444 = arith.mulf %440, %389 : vector<16x32xf32>
    %445 = arith.mulf %439, %443 : vector<16x32xf32>
    %446 = arith.addf %444, %445 : vector<16x32xf32>
    %447 = math.tanh %446 : vector<16x32xf32>
    %448 = arith.mulf %441, %447 : vector<16x32xf32>
    %449 = vector.extract_strided_slice %430 {offsets = [0, 0], sizes = [16, 96], strides = [1, 1]} : vector<16x128xf32> to vector<16x96xf32>
    %cst_134 = arith.constant 5.000000e-01 : f32
    %450 = vector.broadcast %cst_134 : f32 to vector<16x96xf32>
    %451 = arith.mulf %450, %449 : vector<16x96xf32>
    %452 = math.tanh %451 : vector<16x96xf32>
    %cst_135 = arith.constant 1.000000e+00 : f32
    %453 = vector.broadcast %cst_135 : f32 to vector<16x96xf32>
    %454 = arith.addf %452, %453 : vector<16x96xf32>
    %cst_136 = arith.constant 5.000000e-01 : f32
    %455 = vector.broadcast %cst_136 : f32 to vector<16x96xf32>
    %456 = arith.mulf %455, %454 : vector<16x96xf32>
    %457 = vector.extract_strided_slice %456 {offsets = [0, 0], sizes = [16, 32], strides = [1, 1]} : vector<16x96xf32> to vector<16x32xf32>
    %458 = vector.extract_strided_slice %456 {offsets = [0, 32], sizes = [16, 32], strides = [1, 1]} : vector<16x96xf32> to vector<16x32xf32>
    %459 = vector.extract_strided_slice %456 {offsets = [0, 64], sizes = [16, 32], strides = [1, 1]} : vector<16x96xf32> to vector<16x32xf32>
    %460 = vector.extract_strided_slice %430 {offsets = [0, 96], sizes = [16, 32], strides = [1, 1]} : vector<16x128xf32> to vector<16x32xf32>
    %461 = math.tanh %460 : vector<16x32xf32>
    %462 = arith.mulf %458, %407 : vector<16x32xf32>
    %463 = arith.mulf %457, %461 : vector<16x32xf32>
    %464 = arith.addf %462, %463 : vector<16x32xf32>
    %465 = math.tanh %464 : vector<16x32xf32>
    %466 = arith.mulf %459, %465 : vector<16x32xf32>
    %467 = arith.truncf %448 : vector<16x32xf32> to vector<16x32xbf16>
    %468 = arith.index_cast %417 : i32 to index
    %c0_137 = arith.constant 0 : index
    %469 = vector.load %arg14[%468, %c0_137] : memref<128x32xbf16, #tpu.memory_space<vmem>>, vector<16x32xbf16>
    tpu.vector_store %arg14[%468, %c0_137], %467 {strides = array<i32>} : memref<128x32xbf16, #tpu.memory_space<vmem>>, vector<16x32xbf16>,
    %470 = arith.truncf %466 : vector<16x32xf32> to vector<16x32xbf16>
    %471 = arith.index_cast %420 : i32 to index
    %c0_138 = arith.constant 0 : index
    %472 = vector.load %arg15[%471, %c0_138] : memref<128x32xbf16, #tpu.memory_space<vmem>>, vector<16x32xbf16>
    tpu.vector_store %arg15[%471, %c0_138], %470 {strides = array<i32>} : memref<128x32xbf16, #tpu.memory_space<vmem>>, vector<16x32xbf16>,
    %c8_i32 = arith.constant 8 : i32
    %c0_139 = arith.constant 0 : index
    %c0_140 = arith.constant 0 : index
    %473 = vector.load %arg14[%c0_139, %c0_140] : memref<128x32xbf16, #tpu.memory_space<vmem>>, vector<128x32xbf16>
    %c0_141 = arith.constant 0 : index
    %c0_142 = arith.constant 0 : index
    %474 = vector.load %arg8[%c0_141, %c0_142] : memref<32x128xbf16, #tpu.memory_space<vmem>>, vector<32x128xbf16>
    %cst_143 = arith.constant dense<0.000000e+00> : vector<128x128xf32>
    %475 = tpu.matmul %473, %474, %cst_143 {dimension_numbers = #tpu.dot_dimension_numbers<[1], [0], [0], [1], [0, 0, 1, 1], [], []>} : vector<128x32xbf16>, vector<32x128xbf16>, vector<128x128xf32> -> vector<128x128xf32>
    %c0_144 = arith.constant 0 : index
    %c0_145 = arith.constant 0 : index
    %476 = vector.load %arg15[%c0_144, %c0_145] : memref<128x32xbf16, #tpu.memory_space<vmem>>, vector<128x32xbf16>
    %c0_146 = arith.constant 0 : index
    %c0_147 = arith.constant 0 : index
    %477 = vector.load %arg9[%c0_146, %c0_147] : memref<32x128xbf16, #tpu.memory_space<vmem>>, vector<32x128xbf16>
    %cst_148 = arith.constant dense<0.000000e+00> : vector<128x128xf32>
    %478 = tpu.matmul %476, %477, %cst_148 {dimension_numbers = #tpu.dot_dimension_numbers<[1], [0], [0], [1], [0, 0, 1, 1], [], []>} : vector<128x32xbf16>, vector<32x128xbf16>, vector<128x128xf32> -> vector<128x128xf32>
    %479 = arith.addf %475, %478 : vector<128x128xf32>
    %c0_149 = arith.constant 0 : index
    %c0_150 = arith.constant 0 : index
    %480 = vector.load %arg10[%c0_149, %c0_150] : memref<1x128xf32, #tpu.memory_space<vmem>>, vector<1x128xf32>
    %481 = vector.broadcast %480 : vector<1x128xf32> to vector<128x128xf32>
    %482 = arith.addf %479, %481 : vector<128x128xf32>
    %483 = vector.shape_cast %482 : vector<128x128xf32> to vector<8x16x128xf32>
    %c0_151 = arith.constant 0 : index
    %c0_152 = arith.constant 0 : index
    %c0_153 = arith.constant 0 : index
    %484 = vector.load %arg11[%c0_151, %c0_152, %c0_153] : memref<8x16x128xf32, #tpu.memory_space<vmem>>, vector<8x16x128xf32>
    tpu.vector_store %arg11[%c0_151, %c0_152, %c0_153], %483 {strides = array<i32>} : memref<8x16x128xf32, #tpu.memory_space<vmem>>, vector<8x16x128xf32>,
    return
  }
  func.func @transform_0(%arg0: i32) -> (i32, i32, i32) {
    %c0_i32 = arith.constant 0 : i32
    %c0_i32_0 = arith.constant 0 : i32
    %c0_i32_1 = arith.constant 0 : i32
    return %c0_i32, %arg0, %c0_i32_0 : i32, i32, i32
  }
  func.func @transform_1(%arg0: i32) -> (i32, i32) {
    %c0_i32 = arith.constant 0 : i32
    %c0_i32_0 = arith.constant 0 : i32
    %c0_i32_1 = arith.constant 0 : i32
    return %c0_i32, %c0_i32_0 : i32, i32
  }
  func.func @transform_2(%arg0: i32) -> (i32, i32) {
    %c0_i32 = arith.constant 0 : i32
    %c0_i32_0 = arith.constant 0 : i32
    %c0_i32_1 = arith.constant 0 : i32
    return %c0_i32, %c0_i32_0 : i32, i32
  }
  func.func @transform_3(%arg0: i32) -> (i32, i32) {
    %c0_i32 = arith.constant 0 : i32
    %c0_i32_0 = arith.constant 0 : i32
    %c0_i32_1 = arith.constant 0 : i32
    return %c0_i32, %c0_i32_0 : i32, i32
  }
  func.func @transform_4(%arg0: i32) -> (i32, i32) {
    %c0_i32 = arith.constant 0 : i32
    %c0_i32_0 = arith.constant 0 : i32
    %c0_i32_1 = arith.constant 0 : i32
    return %c0_i32, %c0_i32_0 : i32, i32
  }
  func.func @transform_5(%arg0: i32) -> (i32, i32) {
    %c0_i32 = arith.constant 0 : i32
    %c0_i32_0 = arith.constant 0 : i32
    %c0_i32_1 = arith.constant 0 : i32
    return %c0_i32, %c0_i32_0 : i32, i32
  }
  func.func @transform_6(%arg0: i32) -> (i32, i32) {
    %c0_i32 = arith.constant 0 : i32
    %c0_i32_0 = arith.constant 0 : i32
    %c0_i32_1 = arith.constant 0 : i32
    return %c0_i32, %c0_i32_0 : i32, i32
  }
  func.func @transform_7(%arg0: i32) -> (i32, i32) {
    %c0_i32 = arith.constant 0 : i32
    %c0_i32_0 = arith.constant 0 : i32
    %c0_i32_1 = arith.constant 0 : i32
    return %c0_i32, %c0_i32_0 : i32, i32
  }
  func.func @transform_8(%arg0: i32) -> (i32, i32) {
    %c0_i32 = arith.constant 0 : i32
    %c0_i32_0 = arith.constant 0 : i32
    %c0_i32_1 = arith.constant 0 : i32
    return %c0_i32, %c0_i32_0 : i32, i32
  }
  func.func @transform_9(%arg0: i32) -> (i32, i32) {
    %c0_i32 = arith.constant 0 : i32
    %c0_i32_0 = arith.constant 0 : i32
    %c0_i32_1 = arith.constant 0 : i32
    return %c0_i32, %c0_i32_0 : i32, i32
  }
  func.func @transform_10(%arg0: i32) -> (i32, i32, i32) {
    %c0_i32 = arith.constant 0 : i32
    %c0_i32_0 = arith.constant 0 : i32
    %c0_i32_1 = arith.constant 0 : i32
    return %c0_i32, %arg0, %c0_i32_0 : i32, i32, i32
  }
}

</mosaic_0001>

<bundles_post_ra>
// kernel: tpu_custom_call.1
= control target key start
LH: loop header
LB: loop body
LE: loop exit
PB: predicated region body
PF: predicated region fallthrough
CT: control target
= control target key end

     0   :  { %15 = vsyncpa [#allocation7], 0  ;;  %s3979_s0 = inlined_call_operand.hbm [shape: bf16[8,16,64], index: 0, kind: input, shape index: {}]   ;;  %s3980_s1 = inlined_call_operand.hbm [shape: bf16[64,128], index: 1, kind: input, shape index: {}]   ;;  %s3981_s2 = inlined_call_operand.hbm [shape: bf16[32,128], index: 2, kind: input, shape index: {}]   ;;  %s3982_s3 = inlined_call_operand.vmem [shape: f32[1,128], index: 3, kind: input, shape index: {}]   ;;  %s3983_s4 = inlined_call_operand.hbm [shape: bf16[64,128], index: 4, kind: input, shape index: {}]   ;;  %s3984_s5 = inlined_call_operand.vmem [shape: bf16[32,128], index: 5, kind: input, shape index: {}]   ;;  %s3985_s6 = inlined_call_operand.vmem [shape: f32[1,128], index: 6, kind: input, shape index: {}]   ;;  %s3986_s7 = inlined_call_operand.hbm [shape: bf16[32,128], index: 7, kind: input, shape index: {}]   ;;  %s3987_s8 = inlined_call_operand.hbm [shape: bf16[32,128], index: 8, kind: input, shape index: {}]   ;;  %s3988_s9 = inlined_call_operand.vmem [shape: f32[1,128], index: 9, kind: input, shape index: {}]   ;;  %s3989_s10 = inlined_call_operand.hbm [shape: f32[8,16,128], index: 10, kind: output, shape index: {}]  }
   0x1   :  { %16 = vsyncpa [#allocation10], 0 }
   0x2   :  { %17 = vsyncpa [#allocation13], 0 }
   0x3   :  { %18 = vsyncpa [#allocation16], 0 }
   0x4   :  { %19 = vsyncpa [#allocation8], 0  ;;  %s3275_s13 = smov [#allocation9]   ;;  %s3276_s15 = smov [#allocation12]  }
   0x5   :  { %s37_s14 = sshll.u32 %s3275_s13, 4  ;;  %s63_s16 = sshll.u32 %s3276_s15, 4  ;;  %s38_s14 = int_to_ptr.vmem [resolvable:$true] %s37_s14  ;;  %s3345_s16 = int_to_ptr.vmem [resolvable:$true] %s63_s16 }
   0x6   :  { %s3111_s19 = scalar_lea.hbm %s3980_s1, 512 }
   0x7   :  { %p3112_p0 = scmp.ne.s32.totalorder %s3980_s1, %s3111_s19  ;;  %p3115_p1 = scmp.lt.u32.totalorder %s3111_s19, %s3980_s1 }
   0x9   :  { %p3117_p2 = pnand %p3115_p1, %p3112_p0 }
   0xb   :  { %3120 = shalt.err (!%p3117_p2)
}
   0xc   :  { %s3121_s24 = scalar_lea.vmem %s38_s14, 512  ;;  %p3126_p4 = scmp.lt.s32.totalorder %s38_s14, %s38_s14 }
   0xd   :  { %p3122_p3 = scmp.ne.s32.totalorder %s38_s14, %s3121_s24  ;;  %p3127_p5 = scmp.lt.s32.totalorder %s3121_s24, %s3121_s24 }
   0xf   :  { %p3128_p6 = por %p3127_p5, %p3126_p4 }
  0x11   :  { %p3129_p7 = pnand %p3128_p6, %p3122_p3 }
  0x13   :  { %3132 = shalt.err (!%p3129_p7)
}
  0x14   :  { %s3277_s25 = smov 64   ;;  %s3278_s26 = smov 4  }
  0x15   :  { %43 = dma.hbm_to_vmem [thread:$0]  %s3980_s1, 512, %s38_s14, [#allocation10], %s3277_s25, %s3277_s25, %s3278_s26  }
  0x16   :  { %s3133_s11 = scalar_lea.hbm %s3983_s4, 512 }
  0x17   :  { %p3134_p8 = scmp.ne.s32.totalorder %s3983_s4, %s3133_s11  ;;  %p3137_p9 = scmp.lt.u32.totalorder %s3133_s11, %s3983_s4 }
  0x19   :  { %p3139_p10 = pnand %p3137_p9, %p3134_p8 }
  0x1b   :  { %3142 = shalt.err (!%p3139_p10)
}
  0x1c   :  { %s3143_s18 = scalar_lea.vmem %s3345_s16, 512  ;;  %p3148_p12 = scmp.lt.s32.totalorder %s3345_s16, %s3345_s16 }
  0x1d   :  { %p3144_p11 = scmp.ne.s32.totalorder %s3345_s16, %s3143_s18  ;;  %p3149_p13 = scmp.lt.s32.totalorder %s3143_s18, %s3143_s18 }
  0x1f   :  { %p3150_p0 = por %p3149_p13, %p3148_p12 }
  0x21   :  { %p3151_p1 = pnand %p3150_p0, %p3144_p11 }
  0x23   :  { %3154 = shalt.err (!%p3151_p1)
}
  0x24   :  { %69 = dma.hbm_to_vmem [thread:$0]  %s3983_s4, 512, %s3345_s16, [#allocation13], %s3277_s25, %s3277_s25, %s3278_s26  }
  0x25   :  { %s3279_s19 = smov [#allocation6]   ;;  %s3280_s21 = smov [#allocation11]  }
  0x26   :  { %s25_s20 = sshll.u32 %s3279_s19, 4  ;;  %s49_s22 = sshll.u32 %s3280_s21, 4  ;;  %s26_s20 = int_to_ptr.vmem [resolvable:$true] %s25_s20  ;;  %s3382_s22 = int_to_ptr.vmem [resolvable:$true] %s49_s22 }
  0x27   :  { %s3155_s27 = scalar_lea.hbm %s3979_s0, 1024 }
  0x28   :  { %p3156_p2 = scmp.ne.s32.totalorder %s3979_s0, %s3155_s27  ;;  %p3159_p3 = scmp.lt.u32.totalorder %s3155_s27, %s3979_s0 }
  0x2a   :  { %p3161_p4 = pnand %p3159_p3, %p3156_p2 }
  0x2c   :  { %3164 = shalt.err (!%p3161_p4)
}
  0x2d   :  { %s3165_s4 = scalar_lea.vmem %s26_s20, 1024  ;;  %p3170_p6 = scmp.lt.s32.totalorder %s26_s20, %s26_s20 }
  0x2e   :  { %p3166_p5 = scmp.ne.s32.totalorder %s26_s20, %s3165_s4  ;;  %p3171_p7 = scmp.lt.s32.totalorder %s3165_s4, %s3165_s4 }
  0x30   :  { %p3172_p8 = por %p3171_p7, %p3170_p6 }
  0x32   :  { %p3173_p9 = pnand %p3172_p8, %p3166_p5 }
  0x34   :  { %3176 = shalt.err (!%p3173_p9)
}
  0x35   :  { %31 = dma.hbm_to_vmem [thread:$0]  %s3979_s0, 1024, %s26_s20, [#allocation7], %s3277_s25, %s3277_s25, %s3278_s26  }
  0x36   :  { %s3177_s17 = scalar_lea.hbm %s3981_s2, 256 }
  0x37   :  { %p3178_p10 = scmp.ne.s32.totalorder %s3981_s2, %s3177_s17  ;;  %p3181_p11 = scmp.lt.u32.totalorder %s3177_s17, %s3981_s2 }
  0x39   :  { %p3183_p12 = pnand %p3181_p11, %p3178_p10 }
  0x3b   :  { %3186 = shalt.err (!%p3183_p12)
}
  0x3c   :  { %s3187_s21 = scalar_lea.vmem %s3382_s22, 256  ;;  %p3192_p0 = scmp.lt.s32.totalorder %s3382_s22, %s3382_s22 }
  0x3d   :  { %p3188_p13 = scmp.ne.s32.totalorder %s3382_s22, %s3187_s21  ;;  %p3193_p1 = scmp.lt.s32.totalorder %s3187_s21, %s3187_s21 }
  0x3f   :  { %p3194_p2 = por %p3193_p1, %p3192_p0 }
  0x41   :  { %p3195_p3 = pnand %p3194_p2, %p3188_p13 }
  0x43   :  { %3198 = shalt.err (!%p3195_p3)
}
  0x44   :  { %55 = dma.hbm_to_vmem [thread:$0]  %s3981_s2, 256, %s3382_s22, [#allocation10], %s3277_s25, %s3277_s25, %s3278_s26  }
  0x45   :  { %s3281_s23 = smov [#allocation14]   ;;  %s3282_s27 = smov [#allocation15]  }
  0x46   :  { %s79_s24 = sshll.u32 %s3281_s23, 4  ;;  %s91_s28 = sshll.u32 %s3282_s27, 4  ;;  %s80_s24 = int_to_ptr.vmem [resolvable:$true] %s79_s24  ;;  %s3419_s28 = int_to_ptr.vmem [resolvable:$true] %s91_s28 }
  0x47   :  { %s3199_s11 = scalar_lea.hbm %s3986_s7, 256 }
  0x48   :  { %p3200_p4 = scmp.ne.s32.totalorder %s3986_s7, %s3199_s11  ;;  %p3203_p5 = scmp.lt.u32.totalorder %s3199_s11, %s3986_s7 }
  0x4a   :  { %p3205_p6 = pnand %p3203_p5, %p3200_p4 }
  0x4c   :  { %3208 = shalt.err (!%p3205_p6)
}
  0x4d   :  { %s3209_s2 = scalar_lea.vmem %s80_s24, 256  ;;  %p3214_p8 = scmp.lt.s32.totalorder %s80_s24, %s80_s24 }
  0x4e   :  { %p3210_p7 = scmp.ne.s32.totalorder %s80_s24, %s3209_s2  ;;  %p3215_p9 = scmp.lt.s32.totalorder %s3209_s2, %s3209_s2 }
  0x50   :  { %p3216_p10 = por %p3215_p9, %p3214_p8 }
  0x52   :  { %p3217_p11 = pnand %p3216_p10, %p3210_p7 }
  0x54   :  { %3220 = shalt.err (!%p3217_p11)
}
  0x55   :  { %85 = dma.hbm_to_vmem [thread:$0]  %s3986_s7, 256, %s80_s24, [#allocation13], %s3277_s25, %s3277_s25, %s3278_s26  }
  0x56   :  { %s3221_s1 = scalar_lea.hbm %s3987_s8, 256 }
  0x57   :  { %p3222_p12 = scmp.ne.s32.totalorder %s3987_s8, %s3221_s1  ;;  %p3225_p13 = scmp.lt.u32.totalorder %s3221_s1, %s3987_s8 }
  0x59   :  { %p3227_p0 = pnand %p3225_p13, %p3222_p12 }
  0x5b   :  { %3230 = shalt.err (!%p3227_p0)
}
  0x5c   :  { %s3231_s20 = scalar_lea.vmem %s3419_s28, 256  ;;  %p3236_p2 = scmp.lt.s32.totalorder %s3419_s28, %s3419_s28 }
  0x5d   :  { %p3232_p1 = scmp.ne.s32.totalorder %s3419_s28, %s3231_s20  ;;  %p3237_p3 = scmp.lt.s32.totalorder %s3231_s20, %s3231_s20 }
  0x5f   :  { %p3238_p4 = por %p3237_p3, %p3236_p2 }
  0x61   :  { %p3239_p5 = pnand %p3238_p4, %p3232_p1 }
  0x63   :  { %3242 = shalt.err (!%p3239_p5)
}
  0x64   :  { %97 = dma.hbm_to_vmem [thread:$0]  %s3987_s8, 256, %s3419_s28, [#allocation16], %s3277_s25, %s3277_s25, %s3278_s26  }
  0x65   :  { %3265 = dma.done.wait [#allocation7], 1024  }
  0x66   :  { %3266 = vsyncadd [#allocation7], 4294966272 }
  0x67   :  { %3267 = dma.done.wait [#allocation10], 768  }
  0x68   :  { %3268 = vsyncadd [#allocation10], 4294966528 }
  0x69   :  { %3269 = dma.done.wait [#allocation13], 768  }
  0x6a   :  { %3270 = vsyncadd [#allocation13], 4294966528 }
  0x6b   :  { %3271 = dma.done.wait [#allocation16], 256  }
  0x6c   :  { %3272 = vsyncadd [#allocation16], 4294967040  ;;  %v3283_v0 = vmov 0.0   ;;  %vm3284_vm0 = vmmov 0   ;;  %v2891_v1 = vld [vmem:[#allocation9] sm:$0xff]   ;;  %v2892_v2 = vld [vmem:[#allocation9 + $0x8] sm:$0xff]  }
  0x6d   :  { %2692 = vmatprep.subr.bf16.mxu0 %v3283_v0  ;;  %2696 = vmatprep.mubr.msk.bf16.mxu0 %vm3284_vm0, %v3283_v0  ;;  %v2893_v3 = vld [vmem:[#allocation9 + $0x10] sm:$0xff]   ;;  %v3459_v4 = vld [vmem:[#allocation11] sm:$0xff]   ;;  %vm214_vm1 = vcmask 523264   ;;  %v2894_v6 = vld [vmem:[#allocation9 + $0x18] sm:$0xff]   ;;  %v3285_v9 = vmov 0   ;;  %vm526_vm2 = vcmask 261120  }
  0x6e   :  { %2644 = vmatprep.subr.bf16.mxu1 %v2891_v1  ;;  %v2896_v5 = vld [vmem:[#allocation6] sm:$0xff]   ;;  %2693 = vmatpush3.bf16.msra.mxu0 %v3459_v4  ;;  %v3464_v7 = vld [vmem:[#allocation11 + $0x8] sm:$0xff]   ;;  %v2898_v8 = vld [vmem:[#allocation12] sm:$0xff]  }
  0x6f   :  { %2645 = vmatpush3.bf16.msra.mxu1 %v2891_v1  ;;  %2652 = vmatprep.mubr.msk.bf16.mxu1 %vm214_vm1, %v2896_v5  ;;  %v2897_v10 = vld [vmem:[#allocation6 + $0x8] sm:$0xff]   ;;  %v2900_v11 = vld [vmem:[#allocation6 + $0x10] sm:$0xff]   ;;  %v2902_v12 = vld [vmem:[#allocation12 + $0x8] sm:$0xff]  }
  0x70   :  { %2646 = vmatprep.subr.bf16.mxu1 %v2892_v2  ;;  %2694 = vmatprep.subr.bf16.mxu0 %v3283_v0  ;;  %v2905_v13 = vld [vmem:[#allocation12 + $0x10] sm:$0xff]   ;;  %v2901_v14 = vld [vmem:[#allocation6 + $0x18] sm:$0xff]   ;;  %v2908_v16 = vld [vmem:[#allocation12 + $0x18] sm:$0xff]  }
  0x71   :  { %v2903_v15 = vld [vmem:[#allocation6 + $0x20] sm:$0xff]   ;;  %v2904_v17 = vld [vmem:[#allocation6 + $0x28] sm:$0xff]   ;;  %v2906_v18 = vld [vmem:[#allocation6 + $0x30] sm:$0xff]  }
  0x72   :  { %2695 = vmatpush3.bf16.msra.mxu0 %v3464_v7  ;;  %v2907_v19 = vld [vmem:[#allocation6 + $0x38] sm:$0xff]   ;;  %v3486_v20 = vld [vmem:[%s3984_s5] sm:$0xff]   ;;  %v3494_v21 = vld [vmem:[%s3984_s5 + $0x8] sm:$0xff]  }
  0x73   :  { %2647 = vmatpush3.bf16.msra.mxu1 %v2892_v2  ;;  %2708 = vmatprep.subr.bf16.mxu0 %v3283_v0  ;;  %v2479_v25 = vld [vmem:[%s3982_s3] ss:$0 sm:$0xff]  ;;  %s3286_s3 = smov 32  }
  0x74   :  { %2648 = vmatprep.subr.bf16.mxu1 %v2893_v3  ;;  %v2500_v63 = vld [vmem:[%s3985_s6] ss:$0 sm:$0xff] }
  0x75   :  { %2697 = vmatmul.mubr.bf16.vlgmr.msra.gmra.mrb[0].mxu0 %v3285_v9 }
  0x76   :  { %2709 = vmatpush3.bf16.msra.mxu0 %v3459_v4  ;;  %2712 = vmatprep.mubr.msk.bf16.mxu0 %vm3284_vm0, %v3283_v0 }
  0x77   :  { %2649 = vmatpush3.bf16.msra.mxu1 %v2893_v3  ;;  %2710 = vmatprep.subr.bf16.mxu0 %v3283_v0 }
  0x78   :  { %2650 = vmatprep.subr.bf16.mxu1 %v2894_v6 }
  0x7a   :  { %2711 = vmatpush3.bf16.msra.mxu0 %v3464_v7 }
  0x7b   :  { %2651 = vmatpush3.bf16.msra.mxu1 %v2894_v6  ;;  %2724 = vmatprep.subr.bf16.mxu0 %v3283_v0 }
  0x7c   :  { %2668 = vmatprep.subr.bf16.mxu1 %v2898_v8 }
  0x7e   :  { %2653 = vmatmul.mubr.msk.bf16.vlgmr.msra.gmra.mrb[0].mxu1 %vm214_vm1, %v2897_v10 }
  0x7f   :  { %2669 = vmatpush3.bf16.msra.mxu1 %v2898_v8  ;;  %2656 = vmatprep.mubr.msk.bf16.mxu1 %vm214_vm1, %v2900_v11 }
  0x80   :  { %2670 = vmatprep.subr.bf16.mxu1 %v2902_v12 }
  0x83   :  { %2671 = vmatpush3.bf16.msra.mxu1 %v2902_v12 }
  0x84   :  { %2672 = vmatprep.subr.bf16.mxu1 %v2905_v13 }
  0x86   :  { %2657 = vmatmul.mubr.msk.bf16.gmra.mrb[4].mxu1 %vm214_vm1, %v2901_v14 }
  0x87   :  { %2660 = vmatprep.mubr.msk.bf16.mxu1 %vm214_vm1, %v2903_v15  ;;  %2673 = vmatpush3.bf16.msra.mxu1 %v2905_v13 }
  0x88   :  { %2674 = vmatprep.subr.bf16.mxu1 %v2908_v16 }
  0x8b   :  { %2675 = vmatpush3.bf16.msra.mxu1 %v2908_v16 }
  0x8c   :  { %2700 = vmatprep.subr.bf16.mxu1 %v3283_v0 }
  0x8e   :  { %2661 = vmatmul.mubr.msk.bf16.gmra.mrb[8].mxu1 %vm214_vm1, %v2904_v17 }
  0x8f   :  { %2664 = vmatprep.mubr.msk.bf16.mxu1 %vm214_vm1, %v2906_v18 }
  0x96   :  { %2665 = vmatmul.mubr.msk.bf16.gmra.mrb[12].mxu1 %vm214_vm1, %v2907_v19 }
  0x97   :  { %2676 = vmatprep.mubr.msk.bf16.mxu1 %vm214_vm1, %v2896_v5 }
  0x9e   :  { %2677 = vmatmul.mubr.msk.bf16.vlgmr.msra.gmra.mrb[16].mxu1 %vm214_vm1, %v2897_v10 }
  0x9f   :  { %2701 = vmatpush3.bf16.msra.mxu1 %v3486_v20  ;;  %2680 = vmatprep.mubr.msk.bf16.mxu1 %vm214_vm1, %v2900_v11 }
  0xa0   :  { %2702 = vmatprep.subr.bf16.mxu1 %v3283_v0 }
  0xa3   :  { %2703 = vmatpush3.bf16.msra.mxu1 %v3494_v21 }
  0xa4   :  { %2716 = vmatprep.subr.bf16.mxu1 %v3283_v0 }
  0xa6   :  { %2681 = vmatmul.mubr.msk.bf16.gmra.mrb[20].mxu1 %vm214_vm1, %v2901_v14 }
  0xa7   :  { %2684 = vmatprep.mubr.msk.bf16.mxu1 %vm214_vm1, %v2903_v15 }
  0xae   :  { %2685 = vmatmul.mubr.msk.bf16.gmra.mrb[24].mxu1 %vm214_vm1, %v2904_v17 }
  0xaf   :  { %2688 = vmatprep.mubr.msk.bf16.mxu1 %vm214_vm1, %v2906_v18 }
  0xb6   :  { %2689 = vmatmul.mubr.msk.bf16.gmra.mrb[28].mxu1 %vm214_vm1, %v2907_v19 }
  0xb7   :  { %2704 = vmatprep.mubr.msk.bf16.mxu1 %vm3284_vm0, %v3283_v0 }
  0xbe   :  { %2705 = vmatmul.mubr.bf16.vlgmr.msra.gmra.mrb[32].mxu1 %v3285_v9 }
  0xbf   :  { %2717 = vmatpush3.bf16.msra.mxu1 %v3486_v20  ;;  %2720 = vmatprep.mubr.msk.bf16.mxu1 %vm3284_vm0, %v3283_v0 }
  0xc0   :  { %2718 = vmatprep.subr.bf16.mxu1 %v3283_v0 }
  0xc3   :  { %2719 = vmatpush3.bf16.msra.mxu1 %v3494_v21 }
  0xc4   :  { %2732 = vmatprep.subr.bf16.mxu1 %v3283_v0 }
 0x148   :  { %v564_v22 = vpop.f32.mrb[0].mxu0 }
 0x149   :  { %v2698_v23 = vpop.f32.mrb[1].mxu0 }
 0x14a   :  { %v567_v24 = vpop.f32.mrb[2].mxu0 }
 0x14b   :  { %v2699_v26 = vpop.f32.mrb[3].mxu0 }
 0x151   :  { %v2654_v27 = vpop.f32.mrb[0].mxu1 }
 0x152   :  { %v3515_v28 = vadd.f32 %v2654_v27, %v2479_v25  ;;  %v273_v29 = vpop.f32.mrb[1].mxu1 }
 0x153   :  { %v274_v30 = vadd.f32 %v2479_v25, %v273_v29  ;;  %v2655_v31 = vpop.f32.mrb[2].mxu1 }
 0x154   :  { %v3517_v32 = vadd.f32 %v2655_v31, %v2479_v25  ;;  %v276_v33 = vpop.f32.mrb[3].mxu1 }
 0x155   :  { %v277_v34 = vadd.f32 %v2479_v25, %v276_v33  ;;  %v3519_v35 = vadd.f32 %v564_v22, %v274_v30 }
 0x157   :  { %2915 = vtanh.f32 %v3519_v35  ;;  %v3522_v36 = vadd.f32 %v567_v24, %v277_v34 }
 0x159   :  { %v2658_v37 = vpop.f32.mrb[4].mxu1  ;;  %2917 = vtanh.f32 %v3522_v36 }
 0x15a   :  { %v3524_v38 = vadd.f32 %v2658_v37, %v2479_v25  ;;  %v289_v39 = vpop.f32.mrb[5].mxu1 }
 0x15b   :  { %v3527_v40 = vadd.f32 %v2479_v25, %v289_v39  ;;  %v2659_v41 = vpop.f32.mrb[6].mxu1 }
 0x15c   :  { %v3529_v42 = vadd.f32 %v2659_v41, %v2479_v25  ;;  %v292_v43 = vpop.f32.mrb[7].mxu1 }
 0x15d   :  { %v3531_v44 = vadd.f32 %v2479_v25, %v292_v43 }
 0x161   :  { %v2916_v45 = vpop.eup %2915  ;;  %v2662_v46 = vpop.f32.mrb[8].mxu1 }
 0x162   :  { %v3533_v47 = vadd.f32 %v2662_v46, %v2479_v25  ;;  %v305_v48 = vpop.f32.mrb[9].mxu1  ;;  %645 = vrot.lane.b32.xlu1 %v2916_v45, %s3286_s3 }
 0x163   :  { %v3536_v49 = vadd.f32 %v2479_v25, %v305_v48  ;;  %v2663_v50 = vpop.f32.mrb[10].mxu1  ;;  %v2918_v53 = vpop.eup %2917 }
 0x164   :  { %v3538_v51 = vadd.f32 %v2663_v50, %v2479_v25  ;;  %v308_v52 = vpop.f32.mrb[11].mxu1 }
 0x165   :  { %v3540_v54 = vadd.f32 %v2479_v25, %v308_v52 }
 0x166   :  { %647 = vrot.lane.b32.xlu1 %v2918_v53, %s3286_s3 }
 0x169   :  { %v2666_v55 = vpop.f32.mrb[12].mxu1 }
 0x16a   :  { %v3543_v56 = vadd.f32 %v2666_v55, %v2479_v25  ;;  %v321_v57 = vpop.f32.mrb[13].mxu1 }
 0x16b   :  { %v3545_v58 = vadd.f32 %v2479_v25, %v321_v57  ;;  %v2667_v59 = vpop.f32.mrb[14].mxu1 }
 0x16c   :  { %v3547_v60 = vadd.f32 %v2667_v59, %v2479_v25  ;;  %v324_v61 = vpop.f32.mrb[15].mxu1 }
 0x16d   :  { %v3549_v62 = vadd.f32 %v2479_v25, %v324_v61  ;;  %v631_v61 = vmul.f32 0.5, %v3519_v35 }
 0x171   :  { %v2678_v1 = vpop.f32.mrb[16].mxu1 }
 0x172   :  { %v3554_v2 = vadd.f32 %v2678_v1, %v2500_v63  ;;  %v425_v3 = vpop.f32.mrb[17].mxu1 }
 0x173   :  { %v3556_v5 = vadd.f32 %v2500_v63, %v425_v3  ;;  %v2679_v6 = vpop.f32.mrb[18].mxu1 }
 0x174   :  { %v3558_v8 = vadd.f32 %v2679_v6, %v2500_v63  ;;  %v428_v9 = vpop.f32.mrb[19].mxu1 }
 0x175   :  { %v3560_v10 = vadd.f32 %v2500_v63, %v428_v9 }
 0x179   :  { %v2682_v11 = vpop.f32.mrb[20].mxu1 }
 0x17a   :  { %v3562_v12 = vadd.f32 %v2682_v11, %v2500_v63  ;;  %v441_v13 = vpop.f32.mrb[21].mxu1 }
 0x17b   :  { %v3564_v14 = vadd.f32 %v2500_v63, %v441_v13  ;;  %v2683_v15 = vpop.f32.mrb[22].mxu1 }
 0x17c   :  { %v3566_v16 = vadd.f32 %v2683_v15, %v2500_v63  ;;  %v444_v17 = vpop.f32.mrb[23].mxu1 }
 0x17d   :  { %v3568_v18 = vadd.f32 %v2500_v63, %v444_v17 }
 0x181   :  { %v2686_v19 = vpop.f32.mrb[24].mxu1 }
 0x182   :  { %v3570_v22 = vadd.f32 %v2686_v19, %v2500_v63  ;;  %v457_v23 = vpop.f32.mrb[25].mxu1 }
 0x183   :  { %v3572_v24 = vadd.f32 %v2500_v63, %v457_v23  ;;  %v2687_v25 = vpop.f32.mrb[26].mxu1 }
 0x184   :  { %v3574_v26 = vadd.f32 %v2687_v25, %v2500_v63  ;;  %v460_v27 = vpop.f32.mrb[27].mxu1 }
 0x185   :  { %v3576_v29 = vadd.f32 %v2500_v63, %v460_v27 }
 0x189   :  { %v2690_v30 = vpop.f32.mrb[28].mxu1 }
 0x18a   :  { %v473_v31 = vpop.f32.mrb[29].mxu1  ;;  %v482_v41 = vadd.f32 %v2690_v30, %v2500_v63 }
 0x18b   :  { %v3578_v33 = vadd.f32 %v2500_v63, %v473_v31  ;;  %v2691_v34 = vpop.f32.mrb[30].mxu1 }
 0x18c   :  { %v476_v37 = vpop.f32.mrb[31].mxu1  ;;  %v485_v45 = vadd.f32 %v2691_v34, %v2500_v63 }
 0x18d   :  { %v3580_v39 = vadd.f32 %v2500_v63, %v476_v37  ;;  %v632_v63 = vmul.f32 0.5, %v3522_v36 }
 0x191   :  { %v622_v43 = vpop.f32.mrb[32].mxu1 }
 0x192   :  { %v629_v46 = vadd.f32 %v622_v43, %v482_v41  ;;  %v2706_v48 = vpop.f32.mrb[33].mxu1 }
 0x193   :  { %v625_v50 = vpop.f32.mrb[34].mxu1 }
 0x194   :  { %2919 = vtanh.f32 %v629_v46  ;;  %v630_v52 = vadd.f32 %v625_v50, %v485_v45  ;;  %v2707_v53 = vpop.f32.mrb[35].mxu1  ;;  %v675_v59 = vmul.f32 0.5, %v629_v46 }
 0x196   :  { %2921 = vtanh.f32 %v630_v52  ;;  %v676_v1 = vmul.f32 0.5, %v630_v52 }
 0x197   :  { %2923 = vtanh.f32 %v675_v59 }
 0x198   :  { %2925 = vtanh.f32 %v631_v61 }
 0x199   :  { %2927 = vtanh.f32 %v676_v1 }
 0x19a   :  { %2929 = vtanh.f32 %v632_v63 }
 0x19e   :  { %v2920_v55 = vpop.eup %2919 }
 0x19f   :  { %689 = vrot.lane.b32.xlu0 %v2920_v55, %s3286_s3 }
 0x1a0   :  { %v2922_v57 = vpop.eup %2921 }
 0x1a1   :  { %v2924_v3 = vpop.eup %2923 }
 0x1a2   :  { %v2926_v6 = vpop.eup %2925  ;;  %v679_v9 = vadd.f32 1.0, %v2924_v3 }
 0x1a3   :  { %691 = vrot.lane.b32.xlu0 %v2922_v57, %s3286_s3  ;;  %v2928_v11 = vpop.eup %2927  ;;  %v635_v13 = vadd.f32 1.0, %v2926_v6 }
 0x1a4   :  { %v680_v15 = vadd.f32 1.0, %v2928_v11  ;;  %v681_v17 = vmul.f32 0.5, %v679_v9  ;;  %v2930_v19 = vpop.eup %2929 }
 0x1a5   :  { %v636_v30 = vadd.f32 1.0, %v2930_v19  ;;  %v637_v35 = vmul.f32 0.5, %v635_v13 }
 0x1a6   :  { %v682_v31 = vmul.f32 0.5, %v680_v15  ;;  %v685_v46 = vmul.f32 0.0, %v681_v17 }
 0x1a7   :  { %v638_v43 = vmul.f32 0.5, %v636_v30  ;;  %v641_v53 = vmul.f32 0.0, %v637_v35 }
 0x1a8   :  { %v686_v52 = vmul.f32 0.0, %v682_v31 }
 0x1a9   :  { %v642_v1 = vmul.f32 0.0, %v638_v43 }
 0x1d4   :  { %v646_v23 = vpop.permute.xlu1 %645 }
 0x1d5   :  { %v651_v36 = vmul.f32 %v646_v23, %v637_v35 }
 0x1d8   :  { %v648_v41 = vpop.permute.xlu1 %647 }
 0x1d9   :  { %v652_v45 = vmul.f32 %v648_v41, %v638_v43 }
 0x211   :  { %v690_v25 = vpop.permute.xlu0 %689 }
 0x212   :  { %v695_v27 = vmul.f32 %v690_v25, %v681_v17 }
 0x214   :  { %699 = vrot.lane.b32.xlu0 %v695_v27, %s3286_s3 }
 0x215   :  { %v692_v34 = vpop.permute.xlu0 %691 }
 0x216   :  { %v696_v37 = vmul.f32 %v692_v34, %v682_v31 }
 0x218   :  { %701 = vrot.lane.b32.xlu1 %v696_v37, %s3286_s3  ;;  %655 = vrot.lane.b32.xlu0 %v651_v36, %s3286_s3 }
 0x21c   :  { %657 = vrot.lane.b32.xlu1 %v652_v45, %s3286_s3 }
 0x286   :  { %v700_v48 = vpop.permute.xlu0 %699 }
 0x287   :  { %v3590_v50 = vadd.f32 %v700_v48, %v685_v46 }
 0x289   :  { %2931 = vtanh.f32 %v3590_v50 }
 0x28a   :  { %v702_v55 = vpop.permute.xlu1 %701  ;;  %v656_v57 = vpop.permute.xlu0 %655 }
 0x28b   :  { %v3593_v59 = vadd.f32 %v702_v55, %v686_v52  ;;  %v3595_v61 = vadd.f32 %v656_v57, %v641_v53 }
 0x28d   :  { %2933 = vtanh.f32 %v3593_v59 }
 0x28e   :  { %2935 = vtanh.f32 %v3595_v61  ;;  %v658_v63 = vpop.permute.xlu1 %657 }
 0x28f   :  { %v3599_v3 = vadd.f32 %v658_v63, %v642_v1 }
 0x291   :  { %2937 = vtanh.f32 %v3599_v3 }
 0x293   :  { %v2932_v6 = vpop.eup %2931 }
 0x294   :  { %711 = vrot.lane.b32.xlu0 %v2932_v6, %s3286_s3 }
 0x297   :  { %v2934_v9 = vpop.eup %2933 }
 0x298   :  { %v2936_v11 = vpop.eup %2935  ;;  %713 = vrot.lane.b32.xlu1 %v2934_v9, %s3286_s3 }
 0x299   :  { %667 = vrot.lane.b32.xlu0 %v2936_v11, %s3286_s3 }
 0x29b   :  { %v2938_v13 = vpop.eup %2937 }
 0x29c   :  { %669 = vrot.lane.b32.xlu1 %v2938_v13, %s3286_s3 }
 0x306   :  { %v712_v15 = vpop.permute.xlu0 %711 }
 0x307   :  { %v717_v23 = vmul.f32 %v712_v15, %v681_v17 }
 0x30a   :  { %v714_v19 = vpop.permute.xlu1 %713 }
 0x30b   :  { %v718_v25 = vmul.f32 %v714_v19, %v682_v31  ;;  %v668_v27 = vpop.permute.xlu0 %667 }
 0x30c   :  { %v673_v36 = vmul.f32 %v668_v27, %v637_v35 }
 0x30d   :  { %v725_v30 = vpack.c.bf16 %v718_v25, %v717_v23 }
 0x30e   :  { %v670_v34 = vpop.permute.xlu1 %669 }
 0x30f   :  { %v674_v37 = vmul.f32 %v670_v34, %v638_v43  ;;  %727 = vrot.lane.b32.xlu0 %v725_v30, %s3277_s25 }
 0x311   :  { %v719_v41 = vpack.c.bf16 %v674_v37, %v673_v36 }
 0x313   :  { %721 = vrot.lane.b32.xlu1 %v719_v41, %s3277_s25 }
 0x381   :  { %v728_v45 = vpop.permute.xlu0 %727 }
 0x382   :  { %731 = vst.msk [vmem:[#allocation5 + $0x38] sm:$0xff] %vm526_vm2, %v728_v45  ;;  %2721 = vmatmul.mubr.msk.bf16.vlgmr.msra.gmra.mrb[36].mxu1 %vm526_vm2, %v728_v45 }
 0x383   :  { %2733 = vmatpush3.bf16.msra.mxu1 %v3486_v20  ;;  %2736 = vmatprep.mubr.msk.bf16.mxu1 %vm3284_vm0, %v3283_v0 }
 0x384   :  { %2734 = vmatprep.subr.bf16.mxu1 %v3283_v0 }
 0x385   :  { %v722_v17 = vpop.permute.xlu1 %721 }
 0x386   :  { %724 = vst.msk [vmem:[#allocation4] sm:$0xff] %vm526_vm2, %v722_v17  ;;  %2713 = vmatmul.mubr.msk.bf16.vlgmr.msra.gmra.mrb[4].mxu0 %vm526_vm2, %v722_v17 }
 0x387   :  { %2725 = vmatpush3.bf16.msra.mxu0 %v3459_v4  ;;  %2735 = vmatpush3.bf16.msra.mxu1 %v3494_v21 }
 0x388   :  { %2726 = vmatprep.subr.bf16.mxu0 %v3283_v0  ;;  %2728 = vmatprep.mubr.msk.bf16.mxu0 %vm3284_vm0, %v3283_v0 }
 0x389   :  { %2748 = vmatprep.subr.bf16.mxu1 %v3283_v0 }
 0x38b   :  { %2727 = vmatpush3.bf16.msra.mxu0 %v3464_v7 }
 0x38c   :  { %2740 = vmatprep.subr.bf16.mxu0 %v3283_v0 }
 0x455   :  { %v821_v35 = vpop.f32.mrb[36].mxu1 }
 0x456   :  { %v828_v31 = vadd.f32 %v821_v35, %v3578_v33  ;;  %v2722_v43 = vpop.f32.mrb[37].mxu1 }
 0x457   :  { %v824_v46 = vpop.f32.mrb[38].mxu1 }
 0x458   :  { %2939 = vtanh.f32 %v828_v31  ;;  %v829_v48 = vadd.f32 %v824_v46, %v3580_v39  ;;  %v2723_v52 = vpop.f32.mrb[39].mxu1 }
 0x459   :  { %v772_v53 = vpop.f32.mrb[4].mxu0 }
 0x45a   :  { %v779_v55 = vadd.f32 %v772_v53, %v3515_v28  ;;  %v2714_v57 = vpop.f32.mrb[5].mxu0  ;;  %2941 = vtanh.f32 %v829_v48  ;;  %v874_v28 = vmul.f32 0.5, %v828_v31  ;;  %v875_v13 = vmul.f32 0.5, %v829_v48 }
 0x45b   :  { %v775_v1 = vpop.f32.mrb[6].mxu0 }
 0x45c   :  { %v780_v63 = vadd.f32 %v775_v1, %v3517_v32  ;;  %v2715_v6 = vpop.f32.mrb[7].mxu0  ;;  %2943 = vtanh.f32 %v779_v55  ;;  %v830_v15 = vmul.f32 0.5, %v779_v55 }
 0x45e   :  { %2945 = vtanh.f32 %v780_v63  ;;  %v831_v32 = vmul.f32 0.5, %v780_v63 }
 0x45f   :  { %2947 = vtanh.f32 %v874_v28 }
 0x460   :  { %2949 = vtanh.f32 %v875_v13 }
 0x461   :  { %2951 = vtanh.f32 %v830_v15 }
 0x462   :  { %v2940_v9 = vpop.eup %2939  ;;  %2953 = vtanh.f32 %v831_v32 }
 0x463   :  { %888 = vrot.lane.b32.xlu0 %v2940_v9, %s3286_s3 }
 0x464   :  { %v2942_v33 = vpop.eup %2941 }
 0x465   :  { %890 = vrot.lane.b32.xlu1 %v2942_v33, %s3286_s3 }
 0x466   :  { %v2944_v11 = vpop.eup %2943 }
 0x467   :  { %844 = vrot.lane.b32.xlu0 %v2944_v11, %s3286_s3 }
 0x468   :  { %v2946_v39 = vpop.eup %2945 }
 0x469   :  { %846 = vrot.lane.b32.xlu1 %v2946_v39, %s3286_s3  ;;  %v2948_v19 = vpop.eup %2947 }
 0x46a   :  { %v2950_v23 = vpop.eup %2949  ;;  %v878_v25 = vadd.f32 1.0, %v2948_v19 }
 0x46b   :  { %v2952_v27 = vpop.eup %2951  ;;  %v879_v30 = vadd.f32 1.0, %v2950_v23 }
 0x46c   :  { %v2954_v34 = vpop.eup %2953  ;;  %v880_v36 = vmul.f32 0.5, %v878_v25  ;;  %v834_v41 = vadd.f32 1.0, %v2952_v27 }
 0x46d   :  { %v881_v17 = vmul.f32 0.5, %v879_v30  ;;  %v835_v35 = vadd.f32 1.0, %v2954_v34 }
 0x46e   :  { %v836_v46 = vmul.f32 0.5, %v834_v41  ;;  %v884_v1 = vmul.f32 %v880_v36, %v3590_v50 }
 0x46f   :  { %v837_v53 = vmul.f32 0.5, %v835_v35  ;;  %v885_v9 = vmul.f32 %v881_v17, %v3593_v59 }
 0x470   :  { %v840_v39 = vmul.f32 %v836_v46, %v3595_v61 }
 0x471   :  { %v841_v15 = vmul.f32 %v837_v53, %v3599_v3 }
 0x4d5   :  { %v889_v37 = vpop.permute.xlu0 %888 }
 0x4d6   :  { %v894_v45 = vmul.f32 %v889_v37, %v880_v36 }
 0x4d7   :  { %v891_v31 = vpop.permute.xlu1 %890 }
 0x4d8   :  { %898 = vrot.lane.b32.xlu0 %v894_v45, %s3286_s3  ;;  %v895_v43 = vmul.f32 %v891_v31, %v881_v17 }
 0x4d9   :  { %v845_v48 = vpop.permute.xlu0 %844 }
 0x4da   :  { %v850_v52 = vmul.f32 %v845_v48, %v836_v46  ;;  %900 = vrot.lane.b32.xlu1 %v895_v43, %s3286_s3 }
 0x4db   :  { %v847_v55 = vpop.permute.xlu1 %846 }
 0x4dc   :  { %v851_v57 = vmul.f32 %v847_v55, %v837_v53  ;;  %854 = vrot.lane.b32.xlu0 %v850_v52, %s3286_s3 }
 0x4de   :  { %856 = vrot.lane.b32.xlu1 %v851_v57, %s3286_s3 }
 0x54a   :  { %v899_v63 = vpop.permute.xlu0 %898 }
 0x54b   :  { %v3637_v6 = vadd.f32 %v899_v63, %v884_v1 }
 0x54c   :  { %v901_v33 = vpop.permute.xlu1 %900 }
 0x54d   :  { %2955 = vtanh.f32 %v3637_v6  ;;  %v3641_v11 = vadd.f32 %v901_v33, %v885_v9 }
 0x54e   :  { %v855_v28 = vpop.permute.xlu0 %854 }
 0x54f   :  { %2957 = vtanh.f32 %v3641_v11  ;;  %v3645_v13 = vadd.f32 %v855_v28, %v840_v39 }
 0x550   :  { %v857_v50 = vpop.permute.xlu1 %856 }
 0x551   :  { %2959 = vtanh.f32 %v3645_v13  ;;  %v3649_v32 = vadd.f32 %v857_v50, %v841_v15 }
 0x553   :  { %2961 = vtanh.f32 %v3649_v32 }
 0x557   :  { %v2956_v59 = vpop.eup %2955 }
 0x558   :  { %910 = vrot.lane.b32.xlu0 %v2956_v59, %s3286_s3 }
 0x559   :  { %v2958_v19 = vpop.eup %2957 }
 0x55a   :  { %912 = vrot.lane.b32.xlu1 %v2958_v19, %s3286_s3 }
 0x55b   :  { %v2960_v61 = vpop.eup %2959 }
 0x55c   :  { %866 = vrot.lane.b32.xlu0 %v2960_v61, %s3286_s3 }
 0x55d   :  { %v2962_v23 = vpop.eup %2961 }
 0x55e   :  { %868 = vrot.lane.b32.xlu1 %v2962_v23, %s3286_s3 }
 0x5ca   :  { %v911_v3 = vpop.permute.xlu0 %910 }
 0x5cb   :  { %v916_v27 = vmul.f32 %v911_v3, %v880_v36 }
 0x5cc   :  { %v913_v25 = vpop.permute.xlu1 %912 }
 0x5cd   :  { %v917_v30 = vmul.f32 %v913_v25, %v881_v17 }
 0x5ce   :  { %v867_v34 = vpop.permute.xlu0 %866 }
 0x5cf   :  { %v925_v37 = vpack.c.bf16 %v917_v30, %v916_v27  ;;  %v872_v45 = vmul.f32 %v867_v34, %v836_v46 }
 0x5d0   :  { %v869_v41 = vpop.permute.xlu1 %868 }
 0x5d1   :  { %v873_v35 = vmul.f32 %v869_v41, %v837_v53  ;;  %927 = vrot.lane.b32.xlu0 %v925_v37, %s3277_s25 }
 0x5d3   :  { %v918_v31 = vpack.c.bf16 %v873_v35, %v872_v45 }
 0x5d5   :  { %920 = vrot.lane.b32.xlu1 %v918_v31, %s3277_s25 }
 0x643   :  { %v928_v43 = vpop.permute.xlu0 %927 }
 0x644   :  { %931 = vst.msk [vmem:[#allocation5 + $0x30] sm:$0xff] %vm526_vm2, %v928_v43  ;;  %2737 = vmatmul.mubr.msk.bf16.vlgmr.msra.gmra.mrb[40].mxu1 %vm526_vm2, %v928_v43 }
 0x645   :  { %2749 = vmatpush3.bf16.msra.mxu1 %v3486_v20  ;;  %2752 = vmatprep.mubr.msk.bf16.mxu1 %vm3284_vm0, %v3283_v0 }
 0x646   :  { %2750 = vmatprep.subr.bf16.mxu1 %v3283_v0 }
 0x647   :  { %v921_v36 = vpop.permute.xlu1 %920 }
 0x648   :  { %924 = vst.msk [vmem:[#allocation4 + $0x8] sm:$0xff] %vm526_vm2, %v921_v36  ;;  %2729 = vmatmul.mubr.msk.bf16.vlgmr.msra.gmra.mrb[8].mxu0 %vm526_vm2, %v921_v36 }
 0x649   :  { %2741 = vmatpush3.bf16.msra.mxu0 %v3459_v4  ;;  %2751 = vmatpush3.bf16.msra.mxu1 %v3494_v21 }
 0x64a   :  { %2742 = vmatprep.subr.bf16.mxu0 %v3283_v0  ;;  %2744 = vmatprep.mubr.msk.bf16.mxu0 %vm3284_vm0, %v3283_v0 }
 0x64b   :  { %2764 = vmatprep.subr.bf16.mxu1 %v3283_v0 }
 0x64d   :  { %2743 = vmatpush3.bf16.msra.mxu0 %v3464_v7 }
 0x64e   :  { %2756 = vmatprep.subr.bf16.mxu0 %v3283_v0 }
 0x717   :  { %v1021_v17 = vpop.f32.mrb[40].mxu1 }
 0x718   :  { %v1028_v46 = vadd.f32 %v1021_v17, %v3570_v22  ;;  %v2738_v48 = vpop.f32.mrb[41].mxu1 }
 0x719   :  { %v1024_v52 = vpop.f32.mrb[42].mxu1 }
 0x71a   :  { %2963 = vtanh.f32 %v1028_v46  ;;  %v1029_v53 = vadd.f32 %v1024_v52, %v3574_v26  ;;  %v2739_v55 = vpop.f32.mrb[43].mxu1 }
 0x71b   :  { %v972_v57 = vpop.f32.mrb[8].mxu0 }
 0x71c   :  { %v979_v1 = vadd.f32 %v972_v57, %v3527_v40  ;;  %v2730_v63 = vpop.f32.mrb[9].mxu0  ;;  %2965 = vtanh.f32 %v1029_v53  ;;  %v1074_v40 = vmul.f32 0.5, %v1028_v46  ;;  %v1075_v50 = vmul.f32 0.5, %v1029_v53 }
 0x71d   :  { %v975_v9 = vpop.f32.mrb[10].mxu0 }
 0x71e   :  { %v980_v33 = vadd.f32 %v975_v9, %v3531_v44  ;;  %v2731_v39 = vpop.f32.mrb[11].mxu0  ;;  %2967 = vtanh.f32 %v979_v1  ;;  %v1030_v59 = vmul.f32 0.5, %v979_v1 }
 0x720   :  { %2969 = vtanh.f32 %v980_v33  ;;  %v1031_v44 = vmul.f32 0.5, %v980_v33 }
 0x721   :  { %2971 = vtanh.f32 %v1074_v40 }
 0x722   :  { %2973 = vtanh.f32 %v1075_v50 }
 0x723   :  { %2975 = vtanh.f32 %v1030_v59 }
 0x724   :  { %v2964_v28 = vpop.eup %2963  ;;  %2977 = vtanh.f32 %v1031_v44 }
 0x725   :  { %1088 = vrot.lane.b32.xlu0 %v2964_v28, %s3286_s3 }
 0x726   :  { %v2966_v22 = vpop.eup %2965 }
 0x727   :  { %1090 = vrot.lane.b32.xlu1 %v2966_v22, %s3286_s3 }
 0x728   :  { %v2968_v15 = vpop.eup %2967 }
 0x729   :  { %1044 = vrot.lane.b32.xlu0 %v2968_v15, %s3286_s3 }
 0x72a   :  { %v2970_v26 = vpop.eup %2969 }
 0x72b   :  { %1046 = vrot.lane.b32.xlu1 %v2970_v26, %s3286_s3  ;;  %v2972_v19 = vpop.eup %2971 }
 0x72c   :  { %v2974_v61 = vpop.eup %2973  ;;  %v1078_v23 = vadd.f32 1.0, %v2972_v19 }
 0x72d   :  { %v2976_v3 = vpop.eup %2975  ;;  %v1079_v25 = vadd.f32 1.0, %v2974_v61 }
 0x72e   :  { %v2978_v27 = vpop.eup %2977  ;;  %v1080_v30 = vmul.f32 0.5, %v1078_v23  ;;  %v1034_v37 = vadd.f32 1.0, %v2976_v3 }
 0x72f   :  { %v1081_v45 = vmul.f32 0.5, %v1079_v25  ;;  %v1035_v35 = vadd.f32 1.0, %v2978_v27 }
 0x730   :  { %v1036_v36 = vmul.f32 0.5, %v1034_v37  ;;  %v1084_v55 = vmul.f32 %v1080_v30, %v3637_v6 }
 0x731   :  { %v1037_v48 = vmul.f32 0.5, %v1035_v35  ;;  %v1085_v63 = vmul.f32 %v1081_v45, %v3641_v11 }
 0x732   :  { %v1040_v39 = vmul.f32 %v1036_v36, %v3645_v13 }
 0x733   :  { %v1041_v15 = vmul.f32 %v1037_v48, %v3649_v32 }
 0x797   :  { %v1089_v34 = vpop.permute.xlu0 %1088 }
 0x798   :  { %v1094_v41 = vmul.f32 %v1089_v34, %v1080_v30 }
 0x799   :  { %v1091_v31 = vpop.permute.xlu1 %1090 }
 0x79a   :  { %1098 = vrot.lane.b32.xlu0 %v1094_v41, %s3286_s3  ;;  %v1095_v43 = vmul.f32 %v1091_v31, %v1081_v45 }
 0x79b   :  { %v1045_v17 = vpop.permute.xlu0 %1044 }
 0x79c   :  { %v1050_v46 = vmul.f32 %v1045_v17, %v1036_v36  ;;  %1100 = vrot.lane.b32.xlu1 %v1095_v43, %s3286_s3 }
 0x79d   :  { %v1047_v52 = vpop.permute.xlu1 %1046 }
 0x79e   :  { %v1051_v53 = vmul.f32 %v1047_v52, %v1037_v48  ;;  %1054 = vrot.lane.b32.xlu0 %v1050_v46, %s3286_s3 }
 0x7a0   :  { %1056 = vrot.lane.b32.xlu1 %v1051_v53, %s3286_s3 }
 0x80c   :  { %v1099_v57 = vpop.permute.xlu0 %1098 }
 0x80d   :  { %v3687_v1 = vadd.f32 %v1099_v57, %v1084_v55 }
 0x80e   :  { %v1101_v9 = vpop.permute.xlu1 %1100 }
 0x80f   :  { %2979 = vtanh.f32 %v3687_v1  ;;  %v3691_v33 = vadd.f32 %v1101_v9, %v1085_v63 }
 0x810   :  { %v1055_v28 = vpop.permute.xlu0 %1054 }
 0x811   :  { %2981 = vtanh.f32 %v3691_v33  ;;  %v3695_v22 = vadd.f32 %v1055_v28, %v1040_v39 }
 0x812   :  { %v1057_v6 = vpop.permute.xlu1 %1056 }
 0x813   :  { %2983 = vtanh.f32 %v3695_v22  ;;  %v3699_v26 = vadd.f32 %v1057_v6, %v1041_v15 }
 0x815   :  { %2985 = vtanh.f32 %v3699_v26 }
 0x819   :  { %v2980_v11 = vpop.eup %2979 }
 0x81a   :  { %1110 = vrot.lane.b32.xlu0 %v2980_v11, %s3286_s3 }
 0x81b   :  { %v2982_v40 = vpop.eup %2981 }
 0x81c   :  { %1112 = vrot.lane.b32.xlu1 %v2982_v40, %s3286_s3 }
 0x81d   :  { %v2984_v13 = vpop.eup %2983 }
 0x81e   :  { %1066 = vrot.lane.b32.xlu0 %v2984_v13, %s3286_s3 }
 0x81f   :  { %v2986_v50 = vpop.eup %2985 }
 0x820   :  { %1068 = vrot.lane.b32.xlu1 %v2986_v50, %s3286_s3 }
 0x88c   :  { %v1111_v32 = vpop.permute.xlu0 %1110 }
 0x88d   :  { %v1116_v44 = vmul.f32 %v1111_v32, %v1080_v30 }
 0x88e   :  { %v1113_v59 = vpop.permute.xlu1 %1112 }
 0x88f   :  { %v1117_v19 = vmul.f32 %v1113_v59, %v1081_v45 }
 0x890   :  { %v1067_v61 = vpop.permute.xlu0 %1066 }
 0x891   :  { %v1125_v23 = vpack.c.bf16 %v1117_v19, %v1116_v44  ;;  %v1072_v25 = vmul.f32 %v1067_v61, %v1036_v36 }
 0x892   :  { %v1069_v3 = vpop.permute.xlu1 %1068 }
 0x893   :  { %v1073_v27 = vmul.f32 %v1069_v3, %v1037_v48  ;;  %1127 = vrot.lane.b32.xlu0 %v1125_v23, %s3277_s25 }
 0x895   :  { %v1118_v34 = vpack.c.bf16 %v1073_v27, %v1072_v25 }
 0x897   :  { %1120 = vrot.lane.b32.xlu1 %v1118_v34, %s3277_s25 }
 0x905   :  { %v1128_v37 = vpop.permute.xlu0 %1127 }
 0x906   :  { %1131 = vst.msk [vmem:[#allocation5 + $0x28] sm:$0xff] %vm526_vm2, %v1128_v37  ;;  %2753 = vmatmul.mubr.msk.bf16.vlgmr.msra.gmra.mrb[44].mxu1 %vm526_vm2, %v1128_v37 }
 0x907   :  { %2765 = vmatpush3.bf16.msra.mxu1 %v3486_v20  ;;  %2768 = vmatprep.mubr.msk.bf16.mxu1 %vm3284_vm0, %v3283_v0 }
 0x908   :  { %2766 = vmatprep.subr.bf16.mxu1 %v3283_v0 }
 0x909   :  { %v1121_v30 = vpop.permute.xlu1 %1120 }
 0x90a   :  { %1124 = vst.msk [vmem:[#allocation4 + $0x10] sm:$0xff] %vm526_vm2, %v1121_v30  ;;  %2745 = vmatmul.mubr.msk.bf16.vlgmr.msra.gmra.mrb[12].mxu0 %vm526_vm2, %v1121_v30 }
 0x90b   :  { %2757 = vmatpush3.bf16.msra.mxu0 %v3459_v4  ;;  %2767 = vmatpush3.bf16.msra.mxu1 %v3494_v21 }
 0x90c   :  { %2758 = vmatprep.subr.bf16.mxu0 %v3283_v0  ;;  %2760 = vmatprep.mubr.msk.bf16.mxu0 %vm3284_vm0, %v3283_v0 }
 0x90d   :  { %2780 = vmatprep.subr.bf16.mxu1 %v3283_v0 }
 0x90f   :  { %2759 = vmatpush3.bf16.msra.mxu0 %v3464_v7 }
 0x910   :  { %2772 = vmatprep.subr.bf16.mxu0 %v3283_v0 }
 0x9d9   :  { %v1221_v41 = vpop.f32.mrb[44].mxu1 }
 0x9da   :  { %v1228_v45 = vadd.f32 %v1221_v41, %v3572_v24  ;;  %v2754_v35 = vpop.f32.mrb[45].mxu1 }
 0x9db   :  { %v1224_v31 = vpop.f32.mrb[46].mxu1 }
 0x9dc   :  { %2987 = vtanh.f32 %v1228_v45  ;;  %v1229_v4 = vadd.f32 %v1224_v31, %v3576_v29  ;;  %v2755_v43 = vpop.f32.mrb[47].mxu1 }
 0x9dd   :  { %v1172_v36 = vpop.f32.mrb[12].mxu0 }
 0x9de   :  { %v1179_v17 = vadd.f32 %v1172_v36, %v3524_v38  ;;  %v2746_v46 = vpop.f32.mrb[13].mxu0  ;;  %2989 = vtanh.f32 %v1229_v4  ;;  %v1274_v38 = vmul.f32 0.5, %v1228_v45  ;;  %v1275_v57 = vmul.f32 0.5, %v1229_v4 }
 0x9df   :  { %v1175_v48 = vpop.f32.mrb[14].mxu0 }
 0x9e0   :  { %v1180_v52 = vadd.f32 %v1175_v48, %v3529_v42  ;;  %v2747_v7 = vpop.f32.mrb[15].mxu0  ;;  %2991 = vtanh.f32 %v1179_v17  ;;  %v1230_v63 = vmul.f32 0.5, %v1179_v17 }
 0x9e2   :  { %2993 = vtanh.f32 %v1180_v52  ;;  %v1231_v42 = vmul.f32 0.5, %v1180_v52 }
 0x9e3   :  { %2995 = vtanh.f32 %v1274_v38 }
 0x9e4   :  { %2997 = vtanh.f32 %v1275_v57 }
 0x9e5   :  { %2999 = vtanh.f32 %v1230_v63 }
 0x9e6   :  { %v2988_v53 = vpop.eup %2987  ;;  %3001 = vtanh.f32 %v1231_v42 }
 0x9e7   :  { %1288 = vrot.lane.b32.xlu0 %v2988_v53, %s3286_s3 }
 0x9e8   :  { %v2990_v24 = vpop.eup %2989 }
 0x9e9   :  { %1290 = vrot.lane.b32.xlu1 %v2990_v24, %s3286_s3 }
 0x9ea   :  { %v2992_v55 = vpop.eup %2991 }
 0x9eb   :  { %1244 = vrot.lane.b32.xlu0 %v2992_v55, %s3286_s3 }
 0x9ec   :  { %v2994_v29 = vpop.eup %2993 }
 0x9ed   :  { %1246 = vrot.lane.b32.xlu1 %v2994_v29, %s3286_s3  ;;  %v2996_v9 = vpop.eup %2995 }
 0x9ee   :  { %v2998_v39 = vpop.eup %2997  ;;  %v1278_v28 = vadd.f32 1.0, %v2996_v9 }
 0x9ef   :  { %v3000_v15 = vpop.eup %2999  ;;  %v1279_v6 = vadd.f32 1.0, %v2998_v39 }
 0x9f0   :  { %v3002_v11 = vpop.eup %3001  ;;  %v1280_v40 = vmul.f32 0.5, %v1278_v28  ;;  %v1234_v50 = vadd.f32 1.0, %v3000_v15  ;;  %v3766_v15 = vld [vmem:[#allocation11] sm:$0xff]  }
 0x9f1   :  { %v1281_v59 = vmul.f32 0.5, %v1279_v6  ;;  %v1235_v44 = vadd.f32 1.0, %v3002_v11 }
 0x9f2   :  { %v1236_v23 = vmul.f32 0.5, %v1234_v50  ;;  %v1284_v30 = vmul.f32 %v1280_v40, %v3687_v1 }
 0x9f3   :  { %v1237_v27 = vmul.f32 0.5, %v1235_v44  ;;  %v1285_v35 = vmul.f32 %v1281_v59, %v3691_v33 }
 0x9f4   :  { %v1240_v43 = vmul.f32 %v1236_v23, %v3695_v22 }
 0x9f5   :  { %v1241_v46 = vmul.f32 %v1237_v27, %v3699_v26 }
 0xa59   :  { %v1289_v13 = vpop.permute.xlu0 %1288 }
 0xa5a   :  { %v1294_v32 = vmul.f32 %v1289_v13, %v1280_v40 }
 0xa5b   :  { %v1291_v19 = vpop.permute.xlu1 %1290 }
 0xa5c   :  { %1298 = vrot.lane.b32.xlu0 %v1294_v32, %s3286_s3  ;;  %v1295_v61 = vmul.f32 %v1291_v19, %v1281_v59 }
 0xa5d   :  { %v1245_v3 = vpop.permute.xlu0 %1244 }
 0xa5e   :  { %v1250_v25 = vmul.f32 %v1245_v3, %v1236_v23  ;;  %1300 = vrot.lane.b32.xlu1 %v1295_v61, %s3286_s3 }
 0xa5f   :  { %v1247_v34 = vpop.permute.xlu1 %1246 }
 0xa60   :  { %v1251_v37 = vmul.f32 %v1247_v34, %v1237_v27  ;;  %1254 = vrot.lane.b32.xlu0 %v1250_v25, %s3286_s3 }
 0xa62   :  { %1256 = vrot.lane.b32.xlu1 %v1251_v37, %s3286_s3 }
 0xace   :  { %v1299_v41 = vpop.permute.xlu0 %1298 }
 0xacf   :  { %v3737_v45 = vadd.f32 %v1299_v41, %v1284_v30 }
 0xad0   :  { %v1301_v31 = vpop.permute.xlu1 %1300 }
 0xad1   :  { %3003 = vtanh.f32 %v3737_v45  ;;  %v3741_v4 = vadd.f32 %v1301_v31, %v1285_v35 }
 0xad2   :  { %v1255_v36 = vpop.permute.xlu0 %1254 }
 0xad3   :  { %3005 = vtanh.f32 %v3741_v4  ;;  %v3745_v17 = vadd.f32 %v1255_v36, %v1240_v43 }
 0xad4   :  { %v1257_v1 = vpop.permute.xlu1 %1256 }
 0xad5   :  { %3007 = vtanh.f32 %v3745_v17  ;;  %v3749_v48 = vadd.f32 %v1257_v1, %v1241_v46 }
 0xad7   :  { %3009 = vtanh.f32 %v3749_v48 }
 0xadb   :  { %v3004_v33 = vpop.eup %3003 }
 0xadc   :  { %1310 = vrot.lane.b32.xlu0 %v3004_v33, %s3286_s3 }
 0xadd   :  { %v3006_v52 = vpop.eup %3005 }
 0xade   :  { %1312 = vrot.lane.b32.xlu1 %v3006_v52, %s3286_s3 }
 0xadf   :  { %v3008_v22 = vpop.eup %3007 }
 0xae0   :  { %1266 = vrot.lane.b32.xlu0 %v3008_v22, %s3286_s3 }
 0xae1   :  { %v3010_v7 = vpop.eup %3009 }
 0xae2   :  { %1268 = vrot.lane.b32.xlu1 %v3010_v7, %s3286_s3 }
 0xb4e   :  { %v1311_v26 = vpop.permute.xlu0 %1310 }
 0xb4f   :  { %v1316_v24 = vmul.f32 %v1311_v26, %v1280_v40 }
 0xb50   :  { %v1313_v53 = vpop.permute.xlu1 %1312 }
 0xb51   :  { %v1317_v55 = vmul.f32 %v1313_v53, %v1281_v59 }
 0xb52   :  { %v1267_v29 = vpop.permute.xlu0 %1266 }
 0xb53   :  { %v1325_v38 = vpack.c.bf16 %v1317_v55, %v1316_v24  ;;  %v1272_v63 = vmul.f32 %v1267_v29, %v1236_v23 }
 0xb54   :  { %v1269_v57 = vpop.permute.xlu1 %1268 }
 0xb55   :  { %v1273_v42 = vmul.f32 %v1269_v57, %v1237_v27  ;;  %1327 = vrot.lane.b32.xlu0 %v1325_v38, %s3277_s25 }
 0xb57   :  { %v1318_v9 = vpack.c.bf16 %v1273_v42, %v1272_v63 }
 0xb59   :  { %1320 = vrot.lane.b32.xlu1 %v1318_v9, %s3277_s25 }
 0xbc7   :  { %v1328_v39 = vpop.permute.xlu0 %1327 }
 0xbc8   :  { %1331 = vst.msk [vmem:[#allocation5 + $0x20] sm:$0xff] %vm526_vm2, %v1328_v39  ;;  %2769 = vmatmul.mubr.msk.bf16.vlgmr.msra.gmra.mrb[48].mxu1 %vm526_vm2, %v1328_v39 }
 0xbc9   :  { %2781 = vmatpush3.bf16.msra.mxu1 %v3486_v20  ;;  %2784 = vmatprep.mubr.msk.bf16.mxu1 %vm3284_vm0, %v3283_v0  ;;  %v3774_v20 = vld [vmem:[#allocation11 + $0x8] sm:$0xff]  }
 0xbca   :  { %2782 = vmatprep.subr.bf16.mxu1 %v3283_v0 }
 0xbcb   :  { %v1321_v28 = vpop.permute.xlu1 %1320 }
 0xbcc   :  { %1324 = vst.msk [vmem:[#allocation4 + $0x18] sm:$0xff] %vm526_vm2, %v1321_v28  ;;  %2761 = vmatmul.mubr.msk.bf16.vlgmr.msra.gmra.mrb[16].mxu0 %vm526_vm2, %v1321_v28 }
 0xbcd   :  { %2773 = vmatpush3.bf16.msra.mxu0 %v3766_v15  ;;  %2783 = vmatpush3.bf16.msra.mxu1 %v3494_v21 }
 0xbce   :  { %2774 = vmatprep.subr.bf16.mxu0 %v3283_v0  ;;  %2776 = vmatprep.mubr.msk.bf16.mxu0 %vm3284_vm0, %v3283_v0 }
 0xbcf   :  { %2796 = vmatprep.subr.bf16.mxu1 %v3283_v0 }
 0xbd1   :  { %2775 = vmatpush3.bf16.msra.mxu0 %v3774_v20 }
 0xbd2   :  { %2788 = vmatprep.subr.bf16.mxu0 %v3283_v0 }
 0xc9b   :  { %v1421_v6 = vpop.f32.mrb[48].mxu1 }
 0xc9c   :  { %v1428_v11 = vadd.f32 %v1421_v6, %v3562_v12  ;;  %v2770_v40 = vpop.f32.mrb[49].mxu1 }
 0xc9d   :  { %v1424_v13 = vpop.f32.mrb[50].mxu1 }
 0xc9e   :  { %3011 = vtanh.f32 %v1428_v11  ;;  %v1429_v21 = vadd.f32 %v1424_v13, %v3566_v16  ;;  %v2771_v50 = vpop.f32.mrb[51].mxu1 }
 0xc9f   :  { %v1372_v32 = vpop.f32.mrb[16].mxu0 }
 0xca0   :  { %v1379_v59 = vadd.f32 %v1372_v32, %v3536_v49  ;;  %v2762_v44 = vpop.f32.mrb[17].mxu0  ;;  %3013 = vtanh.f32 %v1429_v21  ;;  %v1474_v49 = vmul.f32 0.5, %v1428_v11  ;;  %v1475_v27 = vmul.f32 0.5, %v1429_v21 }
 0xca1   :  { %v1375_v19 = vpop.f32.mrb[18].mxu0 }
 0xca2   :  { %v1380_v61 = vadd.f32 %v1375_v19, %v3540_v54  ;;  %v2763_v23 = vpop.f32.mrb[19].mxu0  ;;  %3015 = vtanh.f32 %v1379_v59  ;;  %v1430_v34 = vmul.f32 0.5, %v1379_v59 }
 0xca4   :  { %3017 = vtanh.f32 %v1380_v61  ;;  %v1431_v54 = vmul.f32 0.5, %v1380_v61 }
 0xca5   :  { %3019 = vtanh.f32 %v1474_v49 }
 0xca6   :  { %3021 = vtanh.f32 %v1475_v27 }
 0xca7   :  { %3023 = vtanh.f32 %v1430_v34  ;;  %v3817_v34 = vld [vmem:[%s3984_s5] sm:$0xff]  }
 0xca8   :  { %v3012_v3 = vpop.eup %3011  ;;  %3025 = vtanh.f32 %v1431_v54 }
 0xca9   :  { %1488 = vrot.lane.b32.xlu0 %v3012_v3, %s3286_s3 }
 0xcaa   :  { %v3014_v12 = vpop.eup %3013 }
 0xcab   :  { %1490 = vrot.lane.b32.xlu1 %v3014_v12, %s3286_s3 }
 0xcac   :  { %v3016_v25 = vpop.eup %3015 }
 0xcad   :  { %1444 = vrot.lane.b32.xlu0 %v3016_v25, %s3286_s3 }
 0xcae   :  { %v3018_v16 = vpop.eup %3017 }
 0xcaf   :  { %1446 = vrot.lane.b32.xlu1 %v3018_v16, %s3286_s3  ;;  %v3020_v37 = vpop.eup %3019 }
 0xcb0   :  { %v3022_v30 = vpop.eup %3021  ;;  %v1478_v41 = vadd.f32 1.0, %v3020_v37  ;;  %v3829_v37 = vld [vmem:[%s3984_s5 + $0x8] sm:$0xff]  }
 0xcb1   :  { %v3024_v35 = vpop.eup %3023  ;;  %v1479_v31 = vadd.f32 1.0, %v3022_v30 }
 0xcb2   :  { %v3026_v43 = vpop.eup %3025  ;;  %v1480_v36 = vmul.f32 0.5, %v1478_v41  ;;  %v1434_v1 = vadd.f32 1.0, %v3024_v35 }
 0xcb3   :  { %v1481_v52 = vmul.f32 0.5, %v1479_v31  ;;  %v1435_v22 = vadd.f32 1.0, %v3026_v43 }
 0xcb4   :  { %v1436_v53 = vmul.f32 0.5, %v1434_v1  ;;  %v1484_v63 = vmul.f32 %v1480_v36, %v3737_v45 }
 0xcb5   :  { %v1437_v29 = vmul.f32 0.5, %v1435_v22  ;;  %v1485_v39 = vmul.f32 %v1481_v52, %v3741_v4 }
 0xcb6   :  { %v1440_v11 = vmul.f32 %v1436_v53, %v3745_v17 }
 0xcb7   :  { %v1441_v21 = vmul.f32 %v1437_v29, %v3749_v48 }
 0xd1b   :  { %v1489_v46 = vpop.permute.xlu0 %1488 }
 0xd1c   :  { %v1494_v33 = vmul.f32 %v1489_v46, %v1480_v36 }
 0xd1d   :  { %v1491_v7 = vpop.permute.xlu1 %1490 }
 0xd1e   :  { %1498 = vrot.lane.b32.xlu0 %v1494_v33, %s3286_s3  ;;  %v1495_v26 = vmul.f32 %v1491_v7, %v1481_v52 }
 0xd1f   :  { %v1445_v24 = vpop.permute.xlu0 %1444 }
 0xd20   :  { %v1450_v55 = vmul.f32 %v1445_v24, %v1436_v53  ;;  %1500 = vrot.lane.b32.xlu1 %v1495_v26, %s3286_s3 }
 0xd21   :  { %v1447_v38 = vpop.permute.xlu1 %1446 }
 0xd22   :  { %v1451_v57 = vmul.f32 %v1447_v38, %v1437_v29  ;;  %1454 = vrot.lane.b32.xlu0 %v1450_v55, %s3286_s3 }
 0xd24   :  { %1456 = vrot.lane.b32.xlu1 %v1451_v57, %s3286_s3 }
 0xd90   :  { %v1499_v42 = vpop.permute.xlu0 %1498 }
 0xd91   :  { %v3791_v9 = vadd.f32 %v1499_v42, %v1484_v63 }
 0xd92   :  { %v1501_v28 = vpop.permute.xlu1 %1500 }
 0xd93   :  { %3027 = vtanh.f32 %v3791_v9  ;;  %v3795_v6 = vadd.f32 %v1501_v28, %v1485_v39 }
 0xd94   :  { %v1455_v40 = vpop.permute.xlu0 %1454 }
 0xd95   :  { %3029 = vtanh.f32 %v3795_v6  ;;  %v3799_v13 = vadd.f32 %v1455_v40, %v1440_v11 }
 0xd96   :  { %v1457_v45 = vpop.permute.xlu1 %1456 }
 0xd97   :  { %3031 = vtanh.f32 %v3799_v13  ;;  %v3803_v50 = vadd.f32 %v1457_v45, %v1441_v21 }
 0xd99   :  { %3033 = vtanh.f32 %v3803_v50 }
 0xd9d   :  { %v3028_v4 = vpop.eup %3027 }
 0xd9e   :  { %1510 = vrot.lane.b32.xlu0 %v3028_v4, %s3286_s3 }
 0xd9f   :  { %v3030_v32 = vpop.eup %3029 }
 0xda0   :  { %1512 = vrot.lane.b32.xlu1 %v3030_v32, %s3286_s3 }
 0xda1   :  { %v3032_v17 = vpop.eup %3031 }
 0xda2   :  { %1466 = vrot.lane.b32.xlu0 %v3032_v17, %s3286_s3 }
 0xda3   :  { %v3034_v59 = vpop.eup %3033 }
 0xda4   :  { %1468 = vrot.lane.b32.xlu1 %v3034_v59, %s3286_s3 }
 0xe10   :  { %v1511_v48 = vpop.permute.xlu0 %1510 }
 0xe11   :  { %v1516_v19 = vmul.f32 %v1511_v48, %v1480_v36 }
 0xe12   :  { %v1513_v44 = vpop.permute.xlu1 %1512 }
 0xe13   :  { %v1517_v61 = vmul.f32 %v1513_v44, %v1481_v52 }
 0xe14   :  { %v1467_v23 = vpop.permute.xlu0 %1466 }
 0xe15   :  { %v1525_v3 = vpack.c.bf16 %v1517_v61, %v1516_v19  ;;  %v1472_v25 = vmul.f32 %v1467_v23, %v1436_v53 }
 0xe16   :  { %v1469_v12 = vpop.permute.xlu1 %1468 }
 0xe17   :  { %v1473_v16 = vmul.f32 %v1469_v12, %v1437_v29  ;;  %1527 = vrot.lane.b32.xlu0 %v1525_v3, %s3277_s25 }
 0xe19   :  { %v1518_v49 = vpack.c.bf16 %v1473_v16, %v1472_v25 }
 0xe1b   :  { %1520 = vrot.lane.b32.xlu1 %v1518_v49, %s3277_s25 }
 0xe89   :  { %v1528_v27 = vpop.permute.xlu0 %1527 }
 0xe8a   :  { %1531 = vst.msk [vmem:[#allocation5 + $0x18] sm:$0xff] %vm526_vm2, %v1528_v27  ;;  %2785 = vmatmul.mubr.msk.bf16.vlgmr.msra.gmra.mrb[52].mxu1 %vm526_vm2, %v1528_v27 }
 0xe8b   :  { %2797 = vmatpush3.bf16.msra.mxu1 %v3817_v34  ;;  %2800 = vmatprep.mubr.msk.bf16.mxu1 %vm3284_vm0, %v3283_v0 }
 0xe8c   :  { %2798 = vmatprep.subr.bf16.mxu1 %v3283_v0 }
 0xe8d   :  { %v1521_v54 = vpop.permute.xlu1 %1520 }
 0xe8e   :  { %1524 = vst.msk [vmem:[#allocation4 + $0x20] sm:$0xff] %vm526_vm2, %v1521_v54  ;;  %2777 = vmatmul.mubr.msk.bf16.vlgmr.msra.gmra.mrb[20].mxu0 %vm526_vm2, %v1521_v54 }
 0xe8f   :  { %2789 = vmatpush3.bf16.msra.mxu0 %v3766_v15  ;;  %2799 = vmatpush3.bf16.msra.mxu1 %v3829_v37 }
 0xe90   :  { %2790 = vmatprep.subr.bf16.mxu0 %v3283_v0  ;;  %2792 = vmatprep.mubr.msk.bf16.mxu0 %vm3284_vm0, %v3283_v0 }
 0xe91   :  { %2812 = vmatprep.subr.bf16.mxu1 %v3283_v0 }
 0xe93   :  { %2791 = vmatpush3.bf16.msra.mxu0 %v3774_v20 }
 0xe94   :  { %2804 = vmatprep.subr.bf16.mxu0 %v3283_v0 }
 0xf5d   :  { %v1621_v30 = vpop.f32.mrb[52].mxu1 }
 0xf5e   :  { %v1628_v41 = vadd.f32 %v1621_v30, %v3564_v14  ;;  %v2786_v35 = vpop.f32.mrb[53].mxu1 }
 0xf5f   :  { %v1624_v31 = vpop.f32.mrb[54].mxu1 }
 0xf60   :  { %3035 = vtanh.f32 %v1628_v41  ;;  %v1629_v43 = vadd.f32 %v1624_v31, %v3568_v18  ;;  %v2787_v36 = vpop.f32.mrb[55].mxu1 }
 0xf61   :  { %v1572_v46 = vpop.f32.mrb[20].mxu0 }
 0xf62   :  { %v1579_v1 = vadd.f32 %v1572_v46, %v3533_v47  ;;  %v2778_v33 = vpop.f32.mrb[21].mxu0  ;;  %3037 = vtanh.f32 %v1629_v43  ;;  %v1674_v47 = vmul.f32 0.5, %v1628_v41  ;;  %v1675_v24 = vmul.f32 0.5, %v1629_v43 }
 0xf63   :  { %v1575_v52 = vpop.f32.mrb[22].mxu0 }
 0xf64   :  { %v1580_v22 = vadd.f32 %v1575_v52, %v3538_v51  ;;  %v2779_v7 = vpop.f32.mrb[23].mxu0  ;;  %3039 = vtanh.f32 %v1579_v1  ;;  %v1630_v55 = vmul.f32 0.5, %v1579_v1 }
 0xf66   :  { %3041 = vtanh.f32 %v1580_v22  ;;  %v1631_v51 = vmul.f32 0.5, %v1580_v22 }
 0xf67   :  { %3043 = vtanh.f32 %v1674_v47 }
 0xf68   :  { %3045 = vtanh.f32 %v1675_v24 }
 0xf69   :  { %3047 = vtanh.f32 %v1630_v55 }
 0xf6a   :  { %v3036_v26 = vpop.eup %3035  ;;  %3049 = vtanh.f32 %v1631_v51 }
 0xf6b   :  { %1688 = vrot.lane.b32.xlu0 %v3036_v26, %s3286_s3 }
 0xf6c   :  { %v3038_v14 = vpop.eup %3037 }
 0xf6d   :  { %1690 = vrot.lane.b32.xlu1 %v3038_v14, %s3286_s3 }
 0xf6e   :  { %v3040_v53 = vpop.eup %3039 }
 0xf6f   :  { %1644 = vrot.lane.b32.xlu0 %v3040_v53, %s3286_s3 }
 0xf70   :  { %v3042_v18 = vpop.eup %3041 }
 0xf71   :  { %1646 = vrot.lane.b32.xlu1 %v3042_v18, %s3286_s3  ;;  %v3044_v29 = vpop.eup %3043 }
 0xf72   :  { %v3046_v38 = vpop.eup %3045  ;;  %v1678_v57 = vadd.f32 1.0, %v3044_v29 }
 0xf73   :  { %v3048_v63 = vpop.eup %3047  ;;  %v1679_v42 = vadd.f32 1.0, %v3046_v38 }
 0xf74   :  { %v3050_v39 = vpop.eup %3049  ;;  %v1680_v28 = vmul.f32 0.5, %v1678_v57  ;;  %v1634_v40 = vadd.f32 1.0, %v3048_v63 }
 0xf75   :  { %v1681_v45 = vmul.f32 0.5, %v1679_v42  ;;  %v1635_v4 = vadd.f32 1.0, %v3050_v39 }
 0xf76   :  { %v1636_v59 = vmul.f32 0.5, %v1634_v40  ;;  %v1684_v3 = vmul.f32 %v1680_v28, %v3791_v9 }
 0xf77   :  { %v1637_v19 = vmul.f32 0.5, %v1635_v4  ;;  %v1685_v16 = vmul.f32 %v1681_v45, %v3795_v6 }
 0xf78   :  { %v1640_v54 = vmul.f32 %v1636_v59, %v3799_v13 }
 0xf79   :  { %v1641_v35 = vmul.f32 %v1637_v19, %v3803_v50 }
 0xfdd   :  { %v1689_v11 = vpop.permute.xlu0 %1688 }
 0xfde   :  { %v1694_v21 = vmul.f32 %v1689_v11, %v1680_v28 }
 0xfdf   :  { %v1691_v32 = vpop.permute.xlu1 %1690 }
 0xfe0   :  { %1698 = vrot.lane.b32.xlu0 %v1694_v21, %s3286_s3  ;;  %v1695_v17 = vmul.f32 %v1691_v32, %v1681_v45 }
 0xfe1   :  { %v1645_v48 = vpop.permute.xlu0 %1644 }
 0xfe2   :  { %v1650_v44 = vmul.f32 %v1645_v48, %v1636_v59  ;;  %1700 = vrot.lane.b32.xlu1 %v1695_v17, %s3286_s3 }
 0xfe3   :  { %v1647_v61 = vpop.permute.xlu1 %1646 }
 0xfe4   :  { %v1651_v23 = vmul.f32 %v1647_v61, %v1637_v19  ;;  %1654 = vrot.lane.b32.xlu0 %v1650_v44, %s3286_s3 }
 0xfe6   :  { %1656 = vrot.lane.b32.xlu1 %v1651_v23, %s3286_s3 }
0x1052   :  { %v1699_v12 = vpop.permute.xlu0 %1698 }
0x1053   :  { %v3851_v25 = vadd.f32 %v1699_v12, %v1684_v3 }
0x1054   :  { %v1701_v49 = vpop.permute.xlu1 %1700 }
0x1055   :  { %3051 = vtanh.f32 %v3851_v25  ;;  %v3855_v27 = vadd.f32 %v1701_v49, %v1685_v16 }
0x1056   :  { %v1655_v30 = vpop.permute.xlu0 %1654 }
0x1057   :  { %3053 = vtanh.f32 %v3855_v27  ;;  %v3859_v41 = vadd.f32 %v1655_v30, %v1640_v54 }
0x1058   :  { %v1657_v9 = vpop.permute.xlu1 %1656 }
0x1059   :  { %3055 = vtanh.f32 %v3859_v41  ;;  %v3863_v31 = vadd.f32 %v1657_v9, %v1641_v35 }
0x105b   :  { %3057 = vtanh.f32 %v3863_v31 }
0x105f   :  { %v3052_v6 = vpop.eup %3051 }
0x1060   :  { %1710 = vrot.lane.b32.xlu0 %v3052_v6, %s3286_s3 }
0x1061   :  { %v3054_v43 = vpop.eup %3053 }
0x1062   :  { %1712 = vrot.lane.b32.xlu1 %v3054_v43, %s3286_s3 }
0x1063   :  { %v3056_v13 = vpop.eup %3055 }
0x1064   :  { %1666 = vrot.lane.b32.xlu0 %v3056_v13, %s3286_s3 }
0x1065   :  { %v3058_v36 = vpop.eup %3057 }
0x1066   :  { %1668 = vrot.lane.b32.xlu1 %v3058_v36, %s3286_s3 }
0x10d2   :  { %v1711_v50 = vpop.permute.xlu0 %1710 }
0x10d3   :  { %v1716_v1 = vmul.f32 %v1711_v50, %v1680_v28 }
0x10d4   :  { %v1713_v46 = vpop.permute.xlu1 %1712 }
0x10d5   :  { %v1717_v33 = vmul.f32 %v1713_v46, %v1681_v45 }
0x10d6   :  { %v1667_v52 = vpop.permute.xlu0 %1666 }
0x10d7   :  { %v1725_v22 = vpack.c.bf16 %v1717_v33, %v1716_v1  ;;  %v1672_v26 = vmul.f32 %v1667_v52, %v1636_v59 }
0x10d8   :  { %v1669_v7 = vpop.permute.xlu1 %1668 }
0x10d9   :  { %v1673_v14 = vmul.f32 %v1669_v7, %v1637_v19  ;;  %1727 = vrot.lane.b32.xlu0 %v1725_v22, %s3277_s25 }
0x10db   :  { %v1718_v53 = vpack.c.bf16 %v1673_v14, %v1672_v26 }
0x10dd   :  { %1720 = vrot.lane.b32.xlu1 %v1718_v53, %s3277_s25 }
0x114b   :  { %v1728_v18 = vpop.permute.xlu0 %1727 }
0x114c   :  { %1731 = vst.msk [vmem:[#allocation5 + $0x10] sm:$0xff] %vm526_vm2, %v1728_v18  ;;  %2801 = vmatmul.mubr.msk.bf16.vlgmr.msra.gmra.mrb[56].mxu1 %vm526_vm2, %v1728_v18 }
0x114d   :  { %2813 = vmatpush3.bf16.msra.mxu1 %v3817_v34  ;;  %2816 = vmatprep.mubr.msk.bf16.mxu1 %vm3284_vm0, %v3283_v0 }
0x114e   :  { %2814 = vmatprep.subr.bf16.mxu1 %v3283_v0 }
0x114f   :  { %v1721_v47 = vpop.permute.xlu1 %1720 }
0x1150   :  { %1724 = vst.msk [vmem:[#allocation4 + $0x28] sm:$0xff] %vm526_vm2, %v1721_v47  ;;  %2793 = vmatmul.mubr.msk.bf16.vlgmr.msra.gmra.mrb[24].mxu0 %vm526_vm2, %v1721_v47 }
0x1151   :  { %2805 = vmatpush3.bf16.msra.mxu0 %v3766_v15  ;;  %2815 = vmatpush3.bf16.msra.mxu1 %v3829_v37 }
0x1152   :  { %2806 = vmatprep.subr.bf16.mxu0 %v3283_v0  ;;  %2808 = vmatprep.mubr.msk.bf16.mxu0 %vm3284_vm0, %v3283_v0 }
0x1155   :  { %2807 = vmatpush3.bf16.msra.mxu0 %v3774_v20 }
0x121f   :  { %v1821_v34 = vpop.f32.mrb[56].mxu1 }
0x1220   :  { %v1828_v24 = vadd.f32 %v1821_v34, %v3554_v2  ;;  %v2802_v55 = vpop.f32.mrb[57].mxu1 }
0x1221   :  { %v1824_v51 = vpop.f32.mrb[58].mxu1 }
0x1222   :  { %3059 = vtanh.f32 %v1828_v24  ;;  %v1829_v29 = vadd.f32 %v1824_v51, %v3558_v8  ;;  %v2803_v38 = vpop.f32.mrb[59].mxu1 }
0x1223   :  { %v1772_v57 = vpop.f32.mrb[24].mxu0 }
0x1224   :  { %v1779_v15 = vadd.f32 %v1772_v57, %v3545_v58  ;;  %v2794_v37 = vpop.f32.mrb[25].mxu0  ;;  %3061 = vtanh.f32 %v1829_v29  ;;  %v1874_v58 = vmul.f32 0.5, %v1828_v24  ;;  %v1875_v28 = vmul.f32 0.5, %v1829_v29 }
0x1225   :  { %v1775_v63 = vpop.f32.mrb[26].mxu0 }
0x1226   :  { %v1780_v42 = vadd.f32 %v1775_v63, %v3549_v62  ;;  %v2795_v0 = vpop.f32.mrb[27].mxu0  ;;  %3063 = vtanh.f32 %v1779_v15  ;;  %v1830_v11 = vmul.f32 0.5, %v1779_v15 }
0x1228   :  { %3065 = vtanh.f32 %v1780_v42  ;;  %v1831_v62 = vmul.f32 0.5, %v1780_v42 }
0x1229   :  { %3067 = vtanh.f32 %v1874_v58 }
0x122a   :  { %3069 = vtanh.f32 %v1875_v28 }
0x122b   :  { %3071 = vtanh.f32 %v1830_v11 }
0x122c   :  { %v3060_v20 = vpop.eup %3059  ;;  %3073 = vtanh.f32 %v1831_v62 }
0x122d   :  { %1888 = vrot.lane.b32.xlu0 %v3060_v20, %s3286_s3 }
0x122e   :  { %v3062_v2 = vpop.eup %3061 }
0x122f   :  { %1890 = vrot.lane.b32.xlu1 %v3062_v2, %s3286_s3 }
0x1230   :  { %v3064_v39 = vpop.eup %3063 }
0x1231   :  { %1844 = vrot.lane.b32.xlu0 %v3064_v39, %s3286_s3 }
0x1232   :  { %v3066_v8 = vpop.eup %3065 }
0x1233   :  { %1846 = vrot.lane.b32.xlu1 %v3066_v8, %s3286_s3  ;;  %v3068_v40 = vpop.eup %3067 }
0x1234   :  { %v3070_v21 = vpop.eup %3069  ;;  %v1878_v45 = vadd.f32 1.0, %v3068_v40 }
0x1235   :  { %v3072_v4 = vpop.eup %3071  ;;  %v1879_v32 = vadd.f32 1.0, %v3070_v21 }
0x1236   :  { %v3074_v17 = vpop.eup %3073  ;;  %v1880_v59 = vmul.f32 0.5, %v1878_v45  ;;  %v1834_v44 = vadd.f32 1.0, %v3072_v4 }
0x1237   :  { %v1881_v61 = vmul.f32 0.5, %v1879_v32  ;;  %v1835_v23 = vadd.f32 1.0, %v3074_v17 }
0x1238   :  { %v1836_v16 = vmul.f32 0.5, %v1834_v44  ;;  %v1884_v6 = vmul.f32 %v1880_v59, %v3851_v25 }
0x1239   :  { %v1837_v30 = vmul.f32 0.5, %v1835_v23  ;;  %v1885_v36 = vmul.f32 %v1881_v61, %v3855_v27 }
0x123a   :  { %v1840_v1 = vmul.f32 %v1836_v16, %v3859_v41 }
0x123b   :  { %v1841_v22 = vmul.f32 %v1837_v30, %v3863_v31 }
0x129f   :  { %v1889_v48 = vpop.permute.xlu0 %1888 }
0x12a0   :  { %v1894_v19 = vmul.f32 %v1889_v48, %v1880_v59 }
0x12a1   :  { %v1891_v3 = vpop.permute.xlu1 %1890 }
0x12a2   :  { %1898 = vrot.lane.b32.xlu0 %v1894_v19, %s3286_s3  ;;  %v1895_v12 = vmul.f32 %v1891_v3, %v1881_v61 }
0x12a3   :  { %v1845_v49 = vpop.permute.xlu0 %1844 }
0x12a4   :  { %v1850_v54 = vmul.f32 %v1845_v49, %v1836_v16  ;;  %1900 = vrot.lane.b32.xlu1 %v1895_v12, %s3286_s3 }
0x12a5   :  { %v1847_v35 = vpop.permute.xlu1 %1846 }
0x12a6   :  { %v1851_v9 = vmul.f32 %v1847_v35, %v1837_v30  ;;  %1854 = vrot.lane.b32.xlu0 %v1850_v54, %s3286_s3 }
0x12a8   :  { %1856 = vrot.lane.b32.xlu1 %v1851_v9, %s3286_s3 }
0x1314   :  { %v1899_v43 = vpop.permute.xlu0 %1898 }
0x1315   :  { %v3899_v13 = vadd.f32 %v1899_v43, %v1884_v6 }
0x1316   :  { %v1901_v50 = vpop.permute.xlu1 %1900 }
0x1317   :  { %3075 = vtanh.f32 %v3899_v13  ;;  %v3903_v46 = vadd.f32 %v1901_v50, %v1885_v36 }
0x1318   :  { %v1855_v33 = vpop.permute.xlu0 %1854 }
0x1319   :  { %3077 = vtanh.f32 %v3903_v46  ;;  %v3907_v52 = vadd.f32 %v1855_v33, %v1840_v1 }
0x131a   :  { %v1857_v25 = vpop.permute.xlu1 %1856 }
0x131b   :  { %3079 = vtanh.f32 %v3907_v52  ;;  %v3911_v7 = vadd.f32 %v1857_v25, %v1841_v22 }
0x131d   :  { %3081 = vtanh.f32 %v3911_v7 }
0x1321   :  { %v3076_v27 = vpop.eup %3075 }
0x1322   :  { %1910 = vrot.lane.b32.xlu0 %v3076_v27, %s3286_s3 }
0x1323   :  { %v3078_v26 = vpop.eup %3077 }
0x1324   :  { %1912 = vrot.lane.b32.xlu1 %v3078_v26, %s3286_s3 }
0x1325   :  { %v3080_v41 = vpop.eup %3079 }
0x1326   :  { %1866 = vrot.lane.b32.xlu0 %v3080_v41, %s3286_s3 }
0x1327   :  { %v3082_v14 = vpop.eup %3081 }
0x1328   :  { %1868 = vrot.lane.b32.xlu1 %v3082_v14, %s3286_s3 }
0x1394   :  { %v1911_v31 = vpop.permute.xlu0 %1910 }
0x1395   :  { %v1916_v18 = vmul.f32 %v1911_v31, %v1880_v59 }
0x1396   :  { %v1913_v53 = vpop.permute.xlu1 %1912 }
0x1397   :  { %v1917_v47 = vmul.f32 %v1913_v53, %v1881_v61 }
0x1398   :  { %v1867_v34 = vpop.permute.xlu0 %1866 }
0x1399   :  { %v1925_v24 = vpack.c.bf16 %v1917_v47, %v1916_v18  ;;  %v1872_v51 = vmul.f32 %v1867_v34, %v1836_v16 }
0x139a   :  { %v1869_v55 = vpop.permute.xlu1 %1868 }
0x139b   :  { %v1873_v29 = vmul.f32 %v1869_v55, %v1837_v30  ;;  %1927 = vrot.lane.b32.xlu0 %v1925_v24, %s3277_s25 }
0x139d   :  { %v1918_v38 = vpack.c.bf16 %v1873_v29, %v1872_v51 }
0x139f   :  { %1920 = vrot.lane.b32.xlu1 %v1918_v38, %s3277_s25 }
0x140d   :  { %v1928_v57 = vpop.permute.xlu0 %1927 }
0x140e   :  { %1931 = vst.msk [vmem:[#allocation5 + $0x8] sm:$0xff] %vm526_vm2, %v1928_v57  ;;  %2817 = vmatmul.mubr.msk.bf16.vlgmr.msra.gmra.mrb[60].mxu1 %vm526_vm2, %v1928_v57  ;;  %v2913_v57 = vld [vmem:[#allocation14] sm:$0xff]  }
0x1411   :  { %v1921_v15 = vpop.permute.xlu1 %1920 }
0x1412   :  { %1924 = vst.msk [vmem:[#allocation4 + $0x30] sm:$0xff] %vm526_vm2, %v1921_v15  ;;  %2809 = vmatmul.mubr.msk.bf16.vlgmr.msra.gmra.mrb[28].mxu0 %vm526_vm2, %v1921_v15 }
0x14e1   :  { %v2020_v37 = vpop.f32.mrb[60].mxu1 }
0x14e2   :  { %v2027_v63 = vadd.f32 %v2020_v37, %v3556_v5  ;;  %v2818_v42 = vpop.f32.mrb[61].mxu1 }
0x14e3   :  { %v2023_v0 = vpop.f32.mrb[62].mxu1 }
0x14e4   :  { %3083 = vtanh.f32 %v2027_v63  ;;  %v2028_v20 = vadd.f32 %v2023_v0, %v3560_v10  ;;  %v2819_v2 = vpop.f32.mrb[63].mxu1 }
0x14e5   :  { %v1972_v39 = vpop.f32.mrb[28].mxu0 }
0x14e6   :  { %v1979_v8 = vadd.f32 %v1972_v39, %v3543_v56  ;;  %v2810_v58 = vpop.f32.mrb[29].mxu0  ;;  %3085 = vtanh.f32 %v2028_v20  ;;  %v2073_v56 = vmul.f32 0.5, %v2027_v63  ;;  %v2074_v45 = vmul.f32 0.5, %v2028_v20 }
0x14e7   :  { %v1975_v28 = vpop.f32.mrb[30].mxu0  ;;  %v2914_v58 = vld [vmem:[#allocation14 + $0x8] sm:$0xff]  }
0x14e8   :  { %v1980_v11 = vadd.f32 %v1975_v28, %v3547_v60  ;;  %v2811_v62 = vpop.f32.mrb[31].mxu0  ;;  %3087 = vtanh.f32 %v1979_v8  ;;  %v2029_v4 = vmul.f32 0.5, %v1979_v8  ;;  %v2143_v28 = vld [vmem:[#allocation5 + $0x8] sm:$0xff] }
0x14e9   :  { %v2145_v62 = vld [vmem:[#allocation5 + $0x18] sm:$0xff] }
0x14ea   :  { %3089 = vtanh.f32 %v1980_v11  ;;  %v2030_v60 = vmul.f32 0.5, %v1980_v11  ;;  %v2144_v11 = vld [vmem:[#allocation5 + $0x10] sm:$0xff] }
0x14eb   :  { %3091 = vtanh.f32 %v2073_v56  ;;  %v2130_v56 = vld [vmem:[#allocation4] sm:$0xff] }
0x14ec   :  { %3093 = vtanh.f32 %v2074_v45  ;;  %v2131_v45 = vld [vmem:[#allocation4 + $0x8] sm:$0xff] }
0x14ed   :  { %3095 = vtanh.f32 %v2029_v4  ;;  %v2132_v4 = vld [vmem:[#allocation4 + $0x10] sm:$0xff] }
0x14ee   :  { %v3084_v40 = vpop.eup %3083  ;;  %3097 = vtanh.f32 %v2030_v60  ;;  %v2133_v60 = vld [vmem:[#allocation4 + $0x18] sm:$0xff] }
0x14ef   :  { %2087 = vrot.lane.b32.xlu0 %v3084_v40, %s3286_s3  ;;  %v2146_v40 = vld [vmem:[#allocation5 + $0x20] sm:$0xff] }
0x14f0   :  { %v3086_v5 = vpop.eup %3085 }
0x14f1   :  { %2089 = vrot.lane.b32.xlu1 %v3086_v5, %s3286_s3  ;;  %v2147_v5 = vld [vmem:[#allocation5 + $0x28] sm:$0xff] }
0x14f2   :  { %v3088_v21 = vpop.eup %3087 }
0x14f3   :  { %2043 = vrot.lane.b32.xlu0 %v3088_v21, %s3286_s3  ;;  %v2148_v21 = vld [vmem:[#allocation5 + $0x30] sm:$0xff] }
0x14f4   :  { %v3090_v10 = vpop.eup %3089 }
0x14f5   :  { %2045 = vrot.lane.b32.xlu1 %v3090_v10, %s3286_s3  ;;  %v3092_v32 = vpop.eup %3091  ;;  %v2149_v10 = vld [vmem:[#allocation5 + $0x38] sm:$0xff] }
0x14f6   :  { %v3094_v17 = vpop.eup %3093  ;;  %v2077_v59 = vadd.f32 1.0, %v3092_v32  ;;  %v2134_v32 = vld [vmem:[#allocation4 + $0x20] sm:$0xff] }
0x14f7   :  { %v3096_v48 = vpop.eup %3095  ;;  %v2078_v44 = vadd.f32 1.0, %v3094_v17  ;;  %v2135_v17 = vld [vmem:[#allocation4 + $0x28] sm:$0xff] }
0x14f8   :  { %v3098_v19 = vpop.eup %3097  ;;  %v2079_v61 = vmul.f32 0.5, %v2077_v59  ;;  %v2033_v3 = vadd.f32 1.0, %v3096_v48  ;;  %v2136_v59 = vld [vmem:[#allocation4 + $0x30] sm:$0xff] }
0x14f9   :  { %v2080_v16 = vmul.f32 0.5, %v2078_v44  ;;  %v2034_v49 = vadd.f32 1.0, %v3098_v19  ;;  %v2551_v44 = vld [vmem:[%s3988_s9] ss:$0 sm:$0xff]  ;;  %s3287_s9 = smov [#allocation17]  }
0x14fa   :  { %v2035_v35 = vmul.f32 0.5, %v2033_v3  ;;  %v2083_v1 = vmul.f32 %v2079_v61, %v3899_v13  ;;  %s2464_s13 = sshll.u32 %s3287_s9, 4  ;;  %s2465_s13 = int_to_ptr.vmem [resolvable:$true] %s2464_s13 }
0x14fb   :  { %v2036_v43 = vmul.f32 0.5, %v2034_v49  ;;  %v2084_v25 = vmul.f32 %v2080_v16, %v3903_v46  ;;  %s3243_s2 = scalar_lea.vmem %s2465_s13, 2048  ;;  %p3248_p7 = scmp.lt.s32.totalorder %s2465_s13, %s2465_s13 }
0x14fc   :  { %v2039_v41 = vmul.f32 %v2035_v35, %v3907_v52  ;;  %v2911_v52 = vld [vmem:[#allocation15] sm:$0xff]   ;;  %p3244_p6 = scmp.ne.s32.totalorder %s2465_s13, %s3243_s2  ;;  %p3249_p8 = scmp.lt.s32.totalorder %s3243_s2, %s3243_s2 }
0x14fd   :  { %v2040_v53 = vmul.f32 %v2036_v43, %v3911_v7  ;;  %2820 = vmatprep.subr.bf16.mxu0 %v2911_v52  ;;  %v2912_v7 = vld [vmem:[#allocation15 + $0x8] sm:$0xff]  }
0x14fe   :  { %2821 = vmatpush3.bf16.msra.mxu0 %v2911_v52  ;;  %p3250_p9 = por %p3249_p8, %p3248_p7 }
0x14ff   :  { %2822 = vmatprep.subr.bf16.mxu0 %v2912_v7 }
0x1500   :  { %p3251_p10 = pnand %p3250_p9, %p3244_p6 }
0x1502   :  { %2823 = vmatpush3.bf16.msra.mxu0 %v2912_v7 }
0x1503   :  { %2840 = vmatprep.subr.bf16.mxu0 %v2913_v57 }
0x1561   :  { %v2088_v23 = vpop.permute.xlu0 %2087 }
0x1562   :  { %v2093_v12 = vmul.f32 %v2088_v23, %v2079_v61 }
0x1563   :  { %v2090_v54 = vpop.permute.xlu1 %2089 }
0x1564   :  { %2097 = vrot.lane.b32.xlu0 %v2093_v12, %s3286_s3  ;;  %v2094_v30 = vmul.f32 %v2090_v54, %v2080_v16 }
0x1565   :  { %v2044_v9 = vpop.permute.xlu0 %2043 }
0x1566   :  { %v2049_v6 = vmul.f32 %v2044_v9, %v2035_v35  ;;  %2099 = vrot.lane.b32.xlu1 %v2094_v30, %s3286_s3 }
0x1567   :  { %v2046_v36 = vpop.permute.xlu1 %2045 }
0x1568   :  { %v2050_v50 = vmul.f32 %v2046_v36, %v2036_v43  ;;  %2053 = vrot.lane.b32.xlu0 %v2049_v6, %s3286_s3 }
0x156a   :  { %2055 = vrot.lane.b32.xlu1 %v2050_v50, %s3286_s3 }
0x15d6   :  { %v2098_v33 = vpop.permute.xlu0 %2097 }
0x15d7   :  { %v2103_v22 = vadd.f32 %v2098_v33, %v2083_v1 }
0x15d8   :  { %v2100_v27 = vpop.permute.xlu1 %2099 }
0x15d9   :  { %3099 = vtanh.f32 %v2103_v22  ;;  %v2104_v26 = vadd.f32 %v2100_v27, %v2084_v25 }
0x15da   :  { %v2054_v14 = vpop.permute.xlu0 %2053 }
0x15db   :  { %3101 = vtanh.f32 %v2104_v26  ;;  %v2059_v31 = vadd.f32 %v2054_v14, %v2039_v41 }
0x15dc   :  { %v2056_v18 = vpop.permute.xlu1 %2055 }
0x15dd   :  { %3103 = vtanh.f32 %v2059_v31  ;;  %v2060_v47 = vadd.f32 %v2056_v18, %v2040_v53 }
0x15df   :  { %3105 = vtanh.f32 %v2060_v47 }
0x15e3   :  { %v3100_v34 = vpop.eup %3099 }
0x15e4   :  { %2109 = vrot.lane.b32.xlu0 %v3100_v34, %s3286_s3 }
0x15e5   :  { %v3102_v13 = vpop.eup %3101 }
0x15e6   :  { %2111 = vrot.lane.b32.xlu1 %v3102_v13, %s3286_s3 }
0x15e7   :  { %v3104_v46 = vpop.eup %3103 }
0x15e8   :  { %2065 = vrot.lane.b32.xlu0 %v3104_v46, %s3286_s3 }
0x15e9   :  { %v3106_v24 = vpop.eup %3105 }
0x15ea   :  { %2067 = vrot.lane.b32.xlu1 %v3106_v24, %s3286_s3 }
0x1656   :  { %v2110_v55 = vpop.permute.xlu0 %2109 }
0x1657   :  { %v2115_v29 = vmul.f32 %v2110_v55, %v2079_v61 }
0x1658   :  { %v2112_v51 = vpop.permute.xlu1 %2111 }
0x1659   :  { %v2116_v38 = vmul.f32 %v2112_v51, %v2080_v16 }
0x165a   :  { %v2066_v15 = vpop.permute.xlu0 %2065 }
0x165b   :  { %v2124_v37 = vpack.c.bf16 %v2116_v38, %v2115_v29  ;;  %v2071_v42 = vmul.f32 %v2066_v15, %v2035_v35 }
0x165c   :  { %v2068_v63 = vpop.permute.xlu1 %2067 }
0x165d   :  { %v2072_v0 = vmul.f32 %v2068_v63, %v2036_v43  ;;  %2126 = vrot.lane.b32.xlu0 %v2124_v37, %s3277_s25 }
0x165f   :  { %v2117_v20 = vpack.c.bf16 %v2072_v0, %v2071_v42 }
0x1661   :  { %2119 = vrot.lane.b32.xlu1 %v2117_v20, %s3277_s25 }
0x16cf   :  { %v2127_v2 = vpop.permute.xlu0 %2126 }
0x16d0   :  { %2129 = vst.msk [vmem:[#allocation5] sm:$0xff] %vm526_vm2, %v2127_v2 }
0x16d3   :  { %v2120_v39 = vpop.permute.xlu1 %2119 }
0x16d4   :  { %2123 = vst.msk [vmem:[#allocation4 + $0x38] sm:$0xff] %vm526_vm2, %v2120_v39 }
0x16d7   :  { %v2142_v8 = vld [vmem:[#allocation5] sm:$0xff] }
0x16d8   :  { %2824 = vmatprep.mubr.msk.bf16.mxu0 %vm526_vm2, %v2142_v8 }
0x16d9   :  { %2825 = vmatmul.mubr.msk.bf16.vlgmr.msra.gmra.mrb[32].mxu0 %vm526_vm2, %v2143_v28 }
0x16da   :  { %2828 = vmatprep.mubr.msk.bf16.mxu0 %vm526_vm2, %v2144_v11  ;;  %2841 = vmatpush3.bf16.msra.mxu0 %v2913_v57 }
0x16db   :  { %2842 = vmatprep.subr.bf16.mxu0 %v2914_v58  ;;  %v2137_v48 = vld [vmem:[#allocation4 + $0x38] sm:$0xff] }
0x16de   :  { %2843 = vmatpush3.bf16.msra.mxu0 %v2914_v58 }
0x16e1   :  { %2829 = vmatmul.mubr.msk.bf16.gmra.mrb[36].mxu0 %vm526_vm2, %v2145_v62 }
0x16e2   :  { %2832 = vmatprep.mubr.msk.bf16.mxu0 %vm526_vm2, %v2146_v40 }
0x16e9   :  { %2833 = vmatmul.mubr.msk.bf16.gmra.mrb[40].mxu0 %vm526_vm2, %v2147_v5 }
0x16ea   :  { %2836 = vmatprep.mubr.msk.bf16.mxu0 %vm526_vm2, %v2148_v21 }
0x16f1   :  { %2837 = vmatmul.mubr.msk.bf16.gmra.mrb[44].mxu0 %vm526_vm2, %v2149_v10 }
0x16f2   :  { %2844 = vmatprep.mubr.msk.bf16.mxu0 %vm526_vm2, %v2130_v56 }
0x16f9   :  { %2845 = vmatmul.mubr.msk.bf16.vlgmr.msra.gmra.mrb[32].mxu0 %vm526_vm2, %v2131_v45 }
0x16fa   :  { %2848 = vmatprep.mubr.msk.bf16.mxu0 %vm526_vm2, %v2132_v4 }
0x1701   :  { %2849 = vmatmul.mubr.msk.bf16.gmra.mrb[36].mxu0 %vm526_vm2, %v2133_v60 }
0x1702   :  { %2852 = vmatprep.mubr.msk.bf16.mxu0 %vm526_vm2, %v2134_v32 }
0x1709   :  { %2853 = vmatmul.mubr.msk.bf16.gmra.mrb[40].mxu0 %vm526_vm2, %v2135_v17 }
0x170a   :  { %2856 = vmatprep.mubr.msk.bf16.mxu0 %vm526_vm2, %v2136_v59 }
0x1711   :  { %2857 = vmatmul.mubr.msk.bf16.gmra.mrb[44].mxu0 %vm526_vm2, %v2137_v48 }
0x17cc   :  { %v2846_v19 = vpop.f32.mrb[32].mxu0 }
0x17cd   :  { %v2429_v61 = vadd.f32 %v2846_v19, %v2551_v44  ;;  %v2357_v23 = vpop.f32.mrb[33].mxu0 }
0x17ce   :  { %v2427_v3 = vadd.f32 %v2551_v44, %v2357_v23  ;;  %v2847_v12 = vpop.f32.mrb[34].mxu0 }
0x17cf   :  { %2445 = vst [vmem:[#allocation17 + $0x10] sm:$0xff] %v2429_v61  ;;  %v2430_v16 = vadd.f32 %v2847_v12, %v2551_v44  ;;  %v2360_v49 = vpop.f32.mrb[35].mxu0 }
0x17d0   :  { %2443 = vst [vmem:[#allocation17] sm:$0xff] %v2427_v3  ;;  %v2428_v54 = vadd.f32 %v2551_v44, %v2360_v49 }
0x17d1   :  { %2446 = vst [vmem:[#allocation17 + $0x18] sm:$0xff] %v2430_v16 }
0x17d2   :  { %2444 = vst [vmem:[#allocation17 + $0x8] sm:$0xff] %v2428_v54 }
0x17d4   :  { %v2850_v30 = vpop.f32.mrb[36].mxu0 }
0x17d5   :  { %v2433_v35 = vadd.f32 %v2850_v30, %v2551_v44  ;;  %v2373_v9 = vpop.f32.mrb[37].mxu0 }
0x17d6   :  { %v2431_v6 = vadd.f32 %v2551_v44, %v2373_v9  ;;  %v2851_v43 = vpop.f32.mrb[38].mxu0 }
0x17d7   :  { %2449 = vst [vmem:[#allocation17 + $0x30] sm:$0xff] %v2433_v35  ;;  %v2434_v36 = vadd.f32 %v2851_v43, %v2551_v44  ;;  %v2376_v50 = vpop.f32.mrb[39].mxu0 }
0x17d8   :  { %2447 = vst [vmem:[#allocation17 + $0x20] sm:$0xff] %v2431_v6  ;;  %v2432_v1 = vadd.f32 %v2551_v44, %v2376_v50 }
0x17d9   :  { %2450 = vst [vmem:[#allocation17 + $0x38] sm:$0xff] %v2434_v36 }
0x17da   :  { %2448 = vst [vmem:[#allocation17 + $0x28] sm:$0xff] %v2432_v1 }
0x17dc   :  { %v2854_v33 = vpop.f32.mrb[40].mxu0 }
0x17dd   :  { %v2437_v22 = vadd.f32 %v2854_v33, %v2551_v44  ;;  %v2389_v25 = vpop.f32.mrb[41].mxu0 }
0x17de   :  { %v2435_v27 = vadd.f32 %v2551_v44, %v2389_v25  ;;  %v2855_v26 = vpop.f32.mrb[42].mxu0 }
0x17df   :  { %2453 = vst [vmem:[#allocation17 + $0x50] sm:$0xff] %v2437_v22  ;;  %v2438_v41 = vadd.f32 %v2855_v26, %v2551_v44  ;;  %v2392_v14 = vpop.f32.mrb[43].mxu0 }
0x17e0   :  { %2451 = vst [vmem:[#allocation17 + $0x40] sm:$0xff] %v2435_v27  ;;  %v2436_v31 = vadd.f32 %v2551_v44, %v2392_v14 }
0x17e1   :  { %2454 = vst [vmem:[#allocation17 + $0x58] sm:$0xff] %v2438_v41 }
0x17e2   :  { %2452 = vst [vmem:[#allocation17 + $0x48] sm:$0xff] %v2436_v31 }
0x17e4   :  { %v2858_v53 = vpop.f32.mrb[44].mxu0 }
0x17e5   :  { %v2441_v18 = vadd.f32 %v2858_v53, %v2551_v44  ;;  %v2405_v47 = vpop.f32.mrb[45].mxu0 }
0x17e6   :  { %v2439_v34 = vadd.f32 %v2551_v44, %v2405_v47  ;;  %v2859_v13 = vpop.f32.mrb[46].mxu0 }
0x17e7   :  { %2457 = vst [vmem:[#allocation17 + $0x70] sm:$0xff] %v2441_v18  ;;  %v2442_v46 = vadd.f32 %v2859_v13, %v2551_v44  ;;  %v2408_v24 = vpop.f32.mrb[47].mxu0 }
0x17e8   :  { %2455 = vst [vmem:[#allocation17 + $0x60] sm:$0xff] %v2439_v34  ;;  %v2440_v52 = vadd.f32 %v2551_v44, %v2408_v24 }
0x17e9   :  { %2458 = vst [vmem:[#allocation17 + $0x78] sm:$0xff] %v2442_v46 }
0x17ea   :  { %2456 = vst [vmem:[#allocation17 + $0x68] sm:$0xff] %v2440_v52 }
0x17eb   :  { %3254 = shalt.err (!%p3251_p10)
}
0x17ec   :  { %s3255_s17 = scalar_lea.hbm %s3989_s10, 2048 }
0x17ed   :  { %p3256_p11 = scmp.ne.s32.totalorder %s3989_s10, %s3255_s17  ;;  %p3259_p12 = scmp.lt.u32.totalorder %s3255_s17, %s3989_s10 }
0x17ef   :  { %p3261_p13 = pnand %p3259_p12, %p3256_p11 }
0x17f1   :  { %3264 = shalt.err (!%p3261_p13)
}
0x17f2   :  { %s3288_s21 = smov 128   ;;  %s3289_s0 = smov 8  }
0x17f3   :  { %2470 = dma.vmem_to_hbm [thread:$0]  %s2465_s13, 2048, %s3989_s10, [#allocation8], %s3288_s21, %s3288_s21, %s3289_s0  }
0x17f4   :  { %3273 = dma.done.wait [#allocation8], 2048  }
0x17f5   :  { %3274 = vsyncadd [#allocation8], 4294965248 }
0x17f6   :  { %2474 = vsyncpa [#allocation7], 1 }
0x17f7   :  { %2475 = vsyncpa [#allocation10], 1 }
0x17f8   :  { %2476 = vsyncpa [#allocation13], 1 }
0x17f9   :  { %2477 = vsyncpa [#allocation16], 1 }
0x17fa   :  { %2478 = vsyncpa [#allocation8], 1 }

</bundles_post_ra>
